<compile_context>
chip_gen: v5e
topology: v5e:2x2
jax: 0.10.0
libtpu: 0.0.40
codegen_flags: <defaults>
</compile_context>

<pallas_src>
import functools

import jax
import jax.numpy as jnp
from jax.experimental import pallas as pl
from jax.experimental.pallas import tpu as pltpu


def _spatial_attn_kernel(w_ref, rmask_ref, cmask_ref, x_ref, o_ref,
                         maxacc_ref, sumacc_ref, *, C, W, K, P, N):
    # w_ref      : SMEM (2*K*K,)           flattened conv weight (OIHW, O=1)
    # rmask_ref  : VMEM (K, N)             row-validity masks per dh
    # cmask_ref  : VMEM (K, N)             col-validity masks per dw
    # x_ref      : VMEM (bt, c_chunk, N)   one channel chunk of `bt` batch rows
    # o_ref      : VMEM (bt, 1, N)         output tile (written on last chunk)
    # maxacc_ref : VMEM (bt, N) f32        running channel max
    # sumacc_ref : VMEM (bt, N) f32        running channel sum
    c_idx = pl.program_id(1)

    # ---- Channel-reduction hot path (lane-dense slab). ----
    xs = x_ref[...]                                        # (bt, c_chunk, N)
    chunk_max = jnp.max(xs, axis=1).astype(jnp.float32)    # max in input dtype
    chunk_sum = jnp.sum(xs.astype(jnp.float32), axis=1)    # sum accumulated f32

    @pl.when(c_idx == 0)
    def _init():
        maxacc_ref[...] = chunk_max
        sumacc_ref[...] = chunk_sum

    @pl.when(c_idx != 0)
    def _update():
        maxacc_ref[...] = jnp.maximum(maxacc_ref[...], chunk_max)
        sumacc_ref[...] = sumacc_ref[...] + chunk_sum

    # ---- Finalize on the last channel chunk: conv + sigmoid + store. ----
    @pl.when(c_idx == pl.num_programs(1) - 1)
    def _finalize():
        maxp = maxacc_ref[...]                             # (bt, N) f32
        meanp = sumacc_ref[...] * (1.0 / C)                # (bt, N) f32

        def advance(v, m):
            # y[..., p] = v[..., (p + m) % N]  (jnp.roll semantics -> shift=-m)
            s = (-m) % N
            return pltpu.roll(v, shift=s, axis=1) if s else v

        # 14 row-shifted, row-masked pooled maps (XLU rolls, hoisted once).
        ys = []
        for src in (maxp, meanp):          # conv input ch 0 = max, ch 1 = mean
            per_kh = []
            for kh in range(K):
                dh = kh - P
                per_kh.append(advance(src, dh * W) * rmask_ref[kh:kh + 1, :])
            ys.append(per_kh)

        # For each column offset: weighted sum over (pool, kh) (98 FMAs total),
        # then one column roll + column border mask.
        acc = jnp.zeros_like(maxp)
        for kw in range(K):
            dw = kw - P
            z = jnp.zeros_like(maxp)
            for ci in range(2):
                base = ci * K * K
                for kh in range(K):
                    z = z + w_ref[base + kh * K + kw] * ys[ci][kh]
            acc = acc + advance(z, dw) * cmask_ref[kw:kw + 1, :]

        o_ref[:, 0, :] = jax.nn.sigmoid(acc).astype(o_ref.dtype)


def _pick_c_chunk(C, batch_tile, N, itemsize, budget_bytes):
    """Largest channel chunk whose (bt, c_chunk, N) block fits the VMEM budget.

    Returns C when the whole channel axis fits; otherwise the largest
    multiple-of-8 divisor of C that fits (keeps the sublane block dim legal).
    """
    per_channel = max(1, batch_tile * N * itemsize)
    max_c = max(1, budget_bytes // per_channel)
    if C <= max_c:
        return C
    best = None
    for d in range(8, C, 8):
        if C % d == 0 and d <= max_c:
            best = d
    return best if best is not None else C


def spatial_attention(x, w, *, batch_tile=1, vmem_block_budget=8 << 20):
    """x: (B, C, H, W), w: (1, 2, K, K) conv weight (no bias). -> (B, 1, H, W)."""
    B, C, H, W = x.shape
    K = w.shape[-1]
    P = (K - 1) // 2
    N = H * W
    assert B % batch_tile == 0

    c_chunk = _pick_c_chunk(C, batch_tile, N, x.dtype.itemsize, vmem_block_budget)

    # Lane-dense spatial layout; reshape is free (contiguous).
    x_flat = x.reshape(B, C, N)
    w_flat = w.reshape(-1).astype(jnp.float32)             # (2*K*K,) -> SMEM

    # Precomputed border masks for the roll-based conv (per dh / dw offset).
    idx = jnp.arange(N, dtype=jnp.int32)
    row, col = idx // W, idx % W
    d = jnp.arange(K, dtype=jnp.int32)[:, None] - P        # (K, 1) offsets
    rmask = ((row[None, :] + d >= 0) & (row[None, :] + d < H)).astype(jnp.float32)
    cmask = ((col[None, :] + d >= 0) & (col[None, :] + d < W)).astype(jnp.float32)

    kernel = functools.partial(_spatial_attn_kernel, C=C, W=W, K=K, P=P, N=N)

    # Note: if B == 1 in production, add a second parallel axis over spatial
    # tiles (with a P-row halo) so both v7x TensorCores get work.
    grid = (B // batch_tile, C // c_chunk)
    out = pl.pallas_call(
        kernel,
        out_shape=jax.ShapeDtypeStruct((B, 1, N), x.dtype),
        grid=grid,
        in_specs=[
            pl.BlockSpec(memory_space=pltpu.MemorySpace.SMEM),           # weights
            pl.BlockSpec((K, N), lambda b, c: (0, 0)),                   # row masks
            pl.BlockSpec((K, N), lambda b, c: (0, 0)),                   # col masks
            pl.BlockSpec((batch_tile, c_chunk, N), lambda b, c: (b, c, 0)),
        ],
        out_specs=pl.BlockSpec((batch_tile, 1, N), lambda b, c: (b, 0, 0)),
        scratch_shapes=[
            pltpu.VMEM((batch_tile, N), jnp.float32),   # running channel max
            pltpu.VMEM((batch_tile, N), jnp.float32),   # running channel sum
        ],
        compiler_params=pltpu.CompilerParams(
            dimension_semantics=("parallel", "arbitrary")),
    )(w_flat, rmask, cmask, x_flat)

    return out.reshape(B, 1, H, W)


def _reference(x, w):
    max_p = jnp.max(x, axis=1, keepdims=True)
    mean_p = jnp.mean(x, axis=1, keepdims=True)
    pooled = jnp.concatenate([max_p, mean_p], axis=1)
    K = w.shape[-1]
    P = (K - 1) // 2
    out = jax.lax.conv_general_dilated(
        pooled, w, window_strides=(1, 1), padding=[(P, P), (P, P)],
        dimension_numbers=("NCHW", "OIHW", "NCHW"))
    return jax.nn.sigmoid(out)


if __name__ == "__main__":
    B, C, H, W = 2, 4, 16, 16
    K = 7

    key = jax.random.PRNGKey(0)
    kx, kw = jax.random.split(key)
    x = jax.random.normal(kx, (B, C, H, W), dtype=jnp.float32)

    # Deterministic conv weight init (matches PyTorch Conv2d fan-in bound).
    bound = 1.0 / (2 * K * K) ** 0.5
    w = jax.random.uniform(kw, (1, 2, K, K), minval=-bound, maxval=bound,
                           dtype=jnp.float32)

    out = jax.block_until_ready(spatial_attention(x, w))

    ref = _reference(x, w)
    assert out.shape == (B, 1, H, W), out.shape
    assert jnp.allclose(out, ref, atol=2e-5, rtol=2e-5), \
        float(jnp.max(jnp.abs(out - ref)))

    print("KERNEL_OK")
</pallas_src>

<mosaic_0001>
module attributes {stable_mosaic.version = 11 : i64} {
  func.func @_spatial_attn_kernel(%arg0: i32, %arg1: i32, %arg2: memref<98xf32, #tpu.memory_space<smem>>, %arg3: memref<7x256xf32, #tpu.memory_space<vmem>>, %arg4: memref<7x256xf32, #tpu.memory_space<vmem>>, %arg5: memref<1x4x256xf32, #tpu.memory_space<vmem>>, %arg6: memref<1x1x256xf32, #tpu.memory_space<vmem>>, %arg7: memref<1x256xf32, #tpu.memory_space<vmem>>, %arg8: memref<1x256xf32, #tpu.memory_space<vmem>>) attributes {dimension_semantics = [#tpu.dimension_semantics<parallel>, #tpu.dimension_semantics<arbitrary>], iteration_bounds = array<i64: 2, 1>, scalar_prefetch = 0 : i64, scratch_operands = 2 : i64, tpu.core_type = #tpu.core_type<tc>, window_params = [{transform_indices = @transform_0, window_bounds = array<i64: 98>}, {pipeline_mode = #tpu.pipeline_mode<synchronous>, transform_indices = @transform_1, window_bounds = array<i64: 7, 256>}, {pipeline_mode = #tpu.pipeline_mode<synchronous>, transform_indices = @transform_2, window_bounds = array<i64: 7, 256>}, {transform_indices = @transform_3, window_bounds = array<i64: 1, 4, 256>}, {transform_indices = @transform_4, window_bounds = array<i64: 1, 1, 256>}]} {
    %c0 = arith.constant 0 : index
    %c0_0 = arith.constant 0 : index
    %c0_1 = arith.constant 0 : index
    %0 = vector.load %arg5[%c0, %c0_0, %c0_1] : memref<1x4x256xf32, #tpu.memory_space<vmem>>, vector<1x4x256xf32>
    %cst = arith.constant dense<0xFF800000> : vector<1x256xf32>
    %1 = vector.multi_reduction <maximumf>, %0, %cst [1] : vector<1x4x256xf32> to vector<1x256xf32>
    %cst_2 = arith.constant dense<0.000000e+00> : vector<1x256xf32>
    %2 = vector.multi_reduction <add>, %0, %cst_2 [1] : vector<1x4x256xf32> to vector<1x256xf32>
    %c0_i32 = arith.constant 0 : i32
    %3 = arith.cmpi eq, %arg1, %c0_i32 : i32
    %4 = arith.extui %3 : i1 to i32
    %c0_i32_3 = arith.constant 0 : i32
    %5 = arith.cmpi ne, %4, %c0_i32_3 : i32
    scf.if %5 {
      %c0_8 = arith.constant 0 : index
      %c0_9 = arith.constant 0 : index
      %12 = vector.load %arg7[%c0_8, %c0_9] : memref<1x256xf32, #tpu.memory_space<vmem>>, vector<1x256xf32>
      tpu.vector_store %arg7[%c0_8, %c0_9], %1 {strides = array<i32>} : memref<1x256xf32, #tpu.memory_space<vmem>>, vector<1x256xf32>,
      %c0_10 = arith.constant 0 : index
      %c0_11 = arith.constant 0 : index
      %13 = vector.load %arg8[%c0_10, %c0_11] : memref<1x256xf32, #tpu.memory_space<vmem>>, vector<1x256xf32>
      tpu.vector_store %arg8[%c0_10, %c0_11], %2 {strides = array<i32>} : memref<1x256xf32, #tpu.memory_space<vmem>>, vector<1x256xf32>,
    } else {
    }
    %c0_i32_4 = arith.constant 0 : i32
    %6 = arith.cmpi ne, %arg1, %c0_i32_4 : i32
    %7 = arith.extui %6 : i1 to i32
    %c0_i32_5 = arith.constant 0 : i32
    %8 = arith.cmpi ne, %7, %c0_i32_5 : i32
    scf.if %8 {
      %c0_8 = arith.constant 0 : index
      %c0_9 = arith.constant 0 : index
      %12 = vector.load %arg7[%c0_8, %c0_9] : memref<1x256xf32, #tpu.memory_space<vmem>>, vector<1x256xf32>
      %13 = arith.maximumf %12, %1 : vector<1x256xf32>
      %c0_10 = arith.constant 0 : index
      %c0_11 = arith.constant 0 : index
      %14 = vector.load %arg7[%c0_10, %c0_11] : memref<1x256xf32, #tpu.memory_space<vmem>>, vector<1x256xf32>
      tpu.vector_store %arg7[%c0_10, %c0_11], %13 {strides = array<i32>} : memref<1x256xf32, #tpu.memory_space<vmem>>, vector<1x256xf32>,
      %c0_12 = arith.constant 0 : index
      %c0_13 = arith.constant 0 : index
      %15 = vector.load %arg8[%c0_12, %c0_13] : memref<1x256xf32, #tpu.memory_space<vmem>>, vector<1x256xf32>
      %16 = arith.addf %15, %2 : vector<1x256xf32>
      %c0_14 = arith.constant 0 : index
      %c0_15 = arith.constant 0 : index
      %17 = vector.load %arg8[%c0_14, %c0_15] : memref<1x256xf32, #tpu.memory_space<vmem>>, vector<1x256xf32>
      tpu.vector_store %arg8[%c0_14, %c0_15], %16 {strides = array<i32>} : memref<1x256xf32, #tpu.memory_space<vmem>>, vector<1x256xf32>,
    } else {
    }
    %c0_i32_6 = arith.constant 0 : i32
    %9 = arith.cmpi eq, %arg1, %c0_i32_6 : i32
    %10 = arith.extui %9 : i1 to i32
    %c0_i32_7 = arith.constant 0 : i32
    %11 = arith.cmpi ne, %10, %c0_i32_7 : i32
    scf.if %11 {
      %c0_8 = arith.constant 0 : index
      %c0_9 = arith.constant 0 : index
      %12 = vector.load %arg7[%c0_8, %c0_9] : memref<1x256xf32, #tpu.memory_space<vmem>>, vector<1x256xf32>
      %c0_10 = arith.constant 0 : index
      %c0_11 = arith.constant 0 : index
      %13 = vector.load %arg8[%c0_10, %c0_11] : memref<1x256xf32, #tpu.memory_space<vmem>>, vector<1x256xf32>
      %cst_12 = arith.constant 2.500000e-01 : f32
      %14 = vector.broadcast %cst_12 : f32 to vector<1x256xf32>
      %15 = arith.mulf %13, %14 : vector<1x256xf32>
      %c48_i32 = arith.constant 48 : i32
      %16 = tpu.dynamic_rotate %12 by %c48_i32 dim 1 : vector<1x256xf32>, i32 -> vector<1x256xf32>
      %c0_13 = arith.constant 0 : index
      %c0_14 = arith.constant 0 : index
      %17 = vector.load %arg3[%c0_13, %c0_14] : memref<7x256xf32, #tpu.memory_space<vmem>>, vector<1x256xf32>
      %18 = arith.mulf %16, %17 : vector<1x256xf32>
      %c32_i32 = arith.constant 32 : i32
      %19 = tpu.dynamic_rotate %12 by %c32_i32 dim 1 : vector<1x256xf32>, i32 -> vector<1x256xf32>
      %c1 = arith.constant 1 : index
      %c0_15 = arith.constant 0 : index
      %20 = vector.load %arg3[%c1, %c0_15] : memref<7x256xf32, #tpu.memory_space<vmem>>, vector<1x256xf32>
      %21 = arith.mulf %19, %20 : vector<1x256xf32>
      %c16_i32 = arith.constant 16 : i32
      %22 = tpu.dynamic_rotate %12 by %c16_i32 dim 1 : vector<1x256xf32>, i32 -> vector<1x256xf32>
      %c2 = arith.constant 2 : index
      %c0_16 = arith.constant 0 : index
      %23 = vector.load %arg3[%c2, %c0_16] : memref<7x256xf32, #tpu.memory_space<vmem>>, vector<1x256xf32>
      %24 = arith.mulf %22, %23 : vector<1x256xf32>
      %c3 = arith.constant 3 : index
      %c0_17 = arith.constant 0 : index
      %25 = vector.load %arg3[%c3, %c0_17] : memref<7x256xf32, #tpu.memory_space<vmem>>, vector<1x256xf32>
      %26 = arith.mulf %12, %25 : vector<1x256xf32>
      %c240_i32 = arith.constant 240 : i32
      %27 = tpu.dynamic_rotate %12 by %c240_i32 dim 1 : vector<1x256xf32>, i32 -> vector<1x256xf32>
      %c4 = arith.constant 4 : index
      %c0_18 = arith.constant 0 : index
      %28 = vector.load %arg3[%c4, %c0_18] : memref<7x256xf32, #tpu.memory_space<vmem>>, vector<1x256xf32>
      %29 = arith.mulf %27, %28 : vector<1x256xf32>
      %c224_i32 = arith.constant 224 : i32
      %30 = tpu.dynamic_rotate %12 by %c224_i32 dim 1 : vector<1x256xf32>, i32 -> vector<1x256xf32>
      %c5 = arith.constant 5 : index
      %c0_19 = arith.constant 0 : index
      %31 = vector.load %arg3[%c5, %c0_19] : memref<7x256xf32, #tpu.memory_space<vmem>>, vector<1x256xf32>
      %32 = arith.mulf %30, %31 : vector<1x256xf32>
      %c208_i32 = arith.constant 208 : i32
      %33 = tpu.dynamic_rotate %12 by %c208_i32 dim 1 : vector<1x256xf32>, i32 -> vector<1x256xf32>
      %c6 = arith.constant 6 : index
      %c0_20 = arith.constant 0 : index
      %34 = vector.load %arg3[%c6, %c0_20] : memref<7x256xf32, #tpu.memory_space<vmem>>, vector<1x256xf32>
      %35 = arith.mulf %33, %34 : vector<1x256xf32>
      %c48_i32_21 = arith.constant 48 : i32
      %36 = tpu.dynamic_rotate %15 by %c48_i32_21 dim 1 : vector<1x256xf32>, i32 -> vector<1x256xf32>
      %c0_22 = arith.constant 0 : index
      %c0_23 = arith.constant 0 : index
      %37 = vector.load %arg3[%c0_22, %c0_23] : memref<7x256xf32, #tpu.memory_space<vmem>>, vector<1x256xf32>
      %38 = arith.mulf %36, %37 : vector<1x256xf32>
      %c32_i32_24 = arith.constant 32 : i32
      %39 = tpu.dynamic_rotate %15 by %c32_i32_24 dim 1 : vector<1x256xf32>, i32 -> vector<1x256xf32>
      %c1_25 = arith.constant 1 : index
      %c0_26 = arith.constant 0 : index
      %40 = vector.load %arg3[%c1_25, %c0_26] : memref<7x256xf32, #tpu.memory_space<vmem>>, vector<1x256xf32>
      %41 = arith.mulf %39, %40 : vector<1x256xf32>
      %c16_i32_27 = arith.constant 16 : i32
      %42 = tpu.dynamic_rotate %15 by %c16_i32_27 dim 1 : vector<1x256xf32>, i32 -> vector<1x256xf32>
      %c2_28 = arith.constant 2 : index
      %c0_29 = arith.constant 0 : index
      %43 = vector.load %arg3[%c2_28, %c0_29] : memref<7x256xf32, #tpu.memory_space<vmem>>, vector<1x256xf32>
      %44 = arith.mulf %42, %43 : vector<1x256xf32>
      %c3_30 = arith.constant 3 : index
      %c0_31 = arith.constant 0 : index
      %45 = vector.load %arg3[%c3_30, %c0_31] : memref<7x256xf32, #tpu.memory_space<vmem>>, vector<1x256xf32>
      %46 = arith.mulf %15, %45 : vector<1x256xf32>
      %c240_i32_32 = arith.constant 240 : i32
      %47 = tpu.dynamic_rotate %15 by %c240_i32_32 dim 1 : vector<1x256xf32>, i32 -> vector<1x256xf32>
      %c4_33 = arith.constant 4 : index
      %c0_34 = arith.constant 0 : index
      %48 = vector.load %arg3[%c4_33, %c0_34] : memref<7x256xf32, #tpu.memory_space<vmem>>, vector<1x256xf32>
      %49 = arith.mulf %47, %48 : vector<1x256xf32>
      %c224_i32_35 = arith.constant 224 : i32
      %50 = tpu.dynamic_rotate %15 by %c224_i32_35 dim 1 : vector<1x256xf32>, i32 -> vector<1x256xf32>
      %c5_36 = arith.constant 5 : index
      %c0_37 = arith.constant 0 : index
      %51 = vector.load %arg3[%c5_36, %c0_37] : memref<7x256xf32, #tpu.memory_space<vmem>>, vector<1x256xf32>
      %52 = arith.mulf %50, %51 : vector<1x256xf32>
      %c208_i32_38 = arith.constant 208 : i32
      %53 = tpu.dynamic_rotate %15 by %c208_i32_38 dim 1 : vector<1x256xf32>, i32 -> vector<1x256xf32>
      %c6_39 = arith.constant 6 : index
      %c0_40 = arith.constant 0 : index
      %54 = vector.load %arg3[%c6_39, %c0_40] : memref<7x256xf32, #tpu.memory_space<vmem>>, vector<1x256xf32>
      %55 = arith.mulf %53, %54 : vector<1x256xf32>
      %cst_41 = arith.constant 0.000000e+00 : f32
      %56 = vector.broadcast %cst_41 : f32 to vector<1x256xf32>
      %cst_42 = arith.constant 0.000000e+00 : f32
      %57 = vector.broadcast %cst_42 : f32 to vector<1x256xf32>
      %c0_43 = arith.constant 0 : index
      %58 = memref.load %arg2[%c0_43] : memref<98xf32, #tpu.memory_space<smem>>
      %59 = vector.broadcast %58 : f32 to vector<1x256xf32>
      %60 = arith.mulf %59, %18 : vector<1x256xf32>
      %61 = arith.addf %57, %60 : vector<1x256xf32>
      %c7 = arith.constant 7 : index
      %62 = memref.load %arg2[%c7] : memref<98xf32, #tpu.memory_space<smem>>
      %63 = vector.broadcast %62 : f32 to vector<1x256xf32>
      %64 = arith.mulf %63, %21 : vector<1x256xf32>
      %65 = arith.addf %61, %64 : vector<1x256xf32>
      %c14 = arith.constant 14 : index
      %66 = memref.load %arg2[%c14] : memref<98xf32, #tpu.memory_space<smem>>
      %67 = vector.broadcast %66 : f32 to vector<1x256xf32>
      %68 = arith.mulf %67, %24 : vector<1x256xf32>
      %69 = arith.addf %65, %68 : vector<1x256xf32>
      %c21 = arith.constant 21 : index
      %70 = memref.load %arg2[%c21] : memref<98xf32, #tpu.memory_space<smem>>
      %71 = vector.broadcast %70 : f32 to vector<1x256xf32>
      %72 = arith.mulf %71, %26 : vector<1x256xf32>
      %73 = arith.addf %69, %72 : vector<1x256xf32>
      %c28 = arith.constant 28 : index
      %74 = memref.load %arg2[%c28] : memref<98xf32, #tpu.memory_space<smem>>
      %75 = vector.broadcast %74 : f32 to vector<1x256xf32>
      %76 = arith.mulf %75, %29 : vector<1x256xf32>
      %77 = arith.addf %73, %76 : vector<1x256xf32>
      %c35 = arith.constant 35 : index
      %78 = memref.load %arg2[%c35] : memref<98xf32, #tpu.memory_space<smem>>
      %79 = vector.broadcast %78 : f32 to vector<1x256xf32>
      %80 = arith.mulf %79, %32 : vector<1x256xf32>
      %81 = arith.addf %77, %80 : vector<1x256xf32>
      %c42 = arith.constant 42 : index
      %82 = memref.load %arg2[%c42] : memref<98xf32, #tpu.memory_space<smem>>
      %83 = vector.broadcast %82 : f32 to vector<1x256xf32>
      %84 = arith.mulf %83, %35 : vector<1x256xf32>
      %85 = arith.addf %81, %84 : vector<1x256xf32>
      %c49 = arith.constant 49 : index
      %86 = memref.load %arg2[%c49] : memref<98xf32, #tpu.memory_space<smem>>
      %87 = vector.broadcast %86 : f32 to vector<1x256xf32>
      %88 = arith.mulf %87, %38 : vector<1x256xf32>
      %89 = arith.addf %85, %88 : vector<1x256xf32>
      %c56 = arith.constant 56 : index
      %90 = memref.load %arg2[%c56] : memref<98xf32, #tpu.memory_space<smem>>
      %91 = vector.broadcast %90 : f32 to vector<1x256xf32>
      %92 = arith.mulf %91, %41 : vector<1x256xf32>
      %93 = arith.addf %89, %92 : vector<1x256xf32>
      %c63 = arith.constant 63 : index
      %94 = memref.load %arg2[%c63] : memref<98xf32, #tpu.memory_space<smem>>
      %95 = vector.broadcast %94 : f32 to vector<1x256xf32>
      %96 = arith.mulf %95, %44 : vector<1x256xf32>
      %97 = arith.addf %93, %96 : vector<1x256xf32>
      %c70 = arith.constant 70 : index
      %98 = memref.load %arg2[%c70] : memref<98xf32, #tpu.memory_space<smem>>
      %99 = vector.broadcast %98 : f32 to vector<1x256xf32>
      %100 = arith.mulf %99, %46 : vector<1x256xf32>
      %101 = arith.addf %97, %100 : vector<1x256xf32>
      %c77 = arith.constant 77 : index
      %102 = memref.load %arg2[%c77] : memref<98xf32, #tpu.memory_space<smem>>
      %103 = vector.broadcast %102 : f32 to vector<1x256xf32>
      %104 = arith.mulf %103, %49 : vector<1x256xf32>
      %105 = arith.addf %101, %104 : vector<1x256xf32>
      %c84 = arith.constant 84 : index
      %106 = memref.load %arg2[%c84] : memref<98xf32, #tpu.memory_space<smem>>
      %107 = vector.broadcast %106 : f32 to vector<1x256xf32>
      %108 = arith.mulf %107, %52 : vector<1x256xf32>
      %109 = arith.addf %105, %108 : vector<1x256xf32>
      %c91 = arith.constant 91 : index
      %110 = memref.load %arg2[%c91] : memref<98xf32, #tpu.memory_space<smem>>
      %111 = vector.broadcast %110 : f32 to vector<1x256xf32>
      %112 = arith.mulf %111, %55 : vector<1x256xf32>
      %113 = arith.addf %109, %112 : vector<1x256xf32>
      %c3_i32 = arith.constant 3 : i32
      %114 = tpu.dynamic_rotate %113 by %c3_i32 dim 1 : vector<1x256xf32>, i32 -> vector<1x256xf32>
      %c0_44 = arith.constant 0 : index
      %c0_45 = arith.constant 0 : index
      %115 = vector.load %arg4[%c0_44, %c0_45] : memref<7x256xf32, #tpu.memory_space<vmem>>, vector<1x256xf32>
      %116 = arith.mulf %114, %115 : vector<1x256xf32>
      %117 = arith.addf %56, %116 : vector<1x256xf32>
      %cst_46 = arith.constant 0.000000e+00 : f32
      %118 = vector.broadcast %cst_46 : f32 to vector<1x256xf32>
      %c1_47 = arith.constant 1 : index
      %119 = memref.load %arg2[%c1_47] : memref<98xf32, #tpu.memory_space<smem>>
      %120 = vector.broadcast %119 : f32 to vector<1x256xf32>
      %121 = arith.mulf %120, %18 : vector<1x256xf32>
      %122 = arith.addf %118, %121 : vector<1x256xf32>
      %c8 = arith.constant 8 : index
      %123 = memref.load %arg2[%c8] : memref<98xf32, #tpu.memory_space<smem>>
      %124 = vector.broadcast %123 : f32 to vector<1x256xf32>
      %125 = arith.mulf %124, %21 : vector<1x256xf32>
      %126 = arith.addf %122, %125 : vector<1x256xf32>
      %c15 = arith.constant 15 : index
      %127 = memref.load %arg2[%c15] : memref<98xf32, #tpu.memory_space<smem>>
      %128 = vector.broadcast %127 : f32 to vector<1x256xf32>
      %129 = arith.mulf %128, %24 : vector<1x256xf32>
      %130 = arith.addf %126, %129 : vector<1x256xf32>
      %c22 = arith.constant 22 : index
      %131 = memref.load %arg2[%c22] : memref<98xf32, #tpu.memory_space<smem>>
      %132 = vector.broadcast %131 : f32 to vector<1x256xf32>
      %133 = arith.mulf %132, %26 : vector<1x256xf32>
      %134 = arith.addf %130, %133 : vector<1x256xf32>
      %c29 = arith.constant 29 : index
      %135 = memref.load %arg2[%c29] : memref<98xf32, #tpu.memory_space<smem>>
      %136 = vector.broadcast %135 : f32 to vector<1x256xf32>
      %137 = arith.mulf %136, %29 : vector<1x256xf32>
      %138 = arith.addf %134, %137 : vector<1x256xf32>
      %c36 = arith.constant 36 : index
      %139 = memref.load %arg2[%c36] : memref<98xf32, #tpu.memory_space<smem>>
      %140 = vector.broadcast %139 : f32 to vector<1x256xf32>
      %141 = arith.mulf %140, %32 : vector<1x256xf32>
      %142 = arith.addf %138, %141 : vector<1x256xf32>
      %c43 = arith.constant 43 : index
      %143 = memref.load %arg2[%c43] : memref<98xf32, #tpu.memory_space<smem>>
      %144 = vector.broadcast %143 : f32 to vector<1x256xf32>
      %145 = arith.mulf %144, %35 : vector<1x256xf32>
      %146 = arith.addf %142, %145 : vector<1x256xf32>
      %c50 = arith.constant 50 : index
      %147 = memref.load %arg2[%c50] : memref<98xf32, #tpu.memory_space<smem>>
      %148 = vector.broadcast %147 : f32 to vector<1x256xf32>
      %149 = arith.mulf %148, %38 : vector<1x256xf32>
      %150 = arith.addf %146, %149 : vector<1x256xf32>
      %c57 = arith.constant 57 : index
      %151 = memref.load %arg2[%c57] : memref<98xf32, #tpu.memory_space<smem>>
      %152 = vector.broadcast %151 : f32 to vector<1x256xf32>
      %153 = arith.mulf %152, %41 : vector<1x256xf32>
      %154 = arith.addf %150, %153 : vector<1x256xf32>
      %c64 = arith.constant 64 : index
      %155 = memref.load %arg2[%c64] : memref<98xf32, #tpu.memory_space<smem>>
      %156 = vector.broadcast %155 : f32 to vector<1x256xf32>
      %157 = arith.mulf %156, %44 : vector<1x256xf32>
      %158 = arith.addf %154, %157 : vector<1x256xf32>
      %c71 = arith.constant 71 : index
      %159 = memref.load %arg2[%c71] : memref<98xf32, #tpu.memory_space<smem>>
      %160 = vector.broadcast %159 : f32 to vector<1x256xf32>
      %161 = arith.mulf %160, %46 : vector<1x256xf32>
      %162 = arith.addf %158, %161 : vector<1x256xf32>
      %c78 = arith.constant 78 : index
      %163 = memref.load %arg2[%c78] : memref<98xf32, #tpu.memory_space<smem>>
      %164 = vector.broadcast %163 : f32 to vector<1x256xf32>
      %165 = arith.mulf %164, %49 : vector<1x256xf32>
      %166 = arith.addf %162, %165 : vector<1x256xf32>
      %c85 = arith.constant 85 : index
      %167 = memref.load %arg2[%c85] : memref<98xf32, #tpu.memory_space<smem>>
      %168 = vector.broadcast %167 : f32 to vector<1x256xf32>
      %169 = arith.mulf %168, %52 : vector<1x256xf32>
      %170 = arith.addf %166, %169 : vector<1x256xf32>
      %c92 = arith.constant 92 : index
      %171 = memref.load %arg2[%c92] : memref<98xf32, #tpu.memory_space<smem>>
      %172 = vector.broadcast %171 : f32 to vector<1x256xf32>
      %173 = arith.mulf %172, %55 : vector<1x256xf32>
      %174 = arith.addf %170, %173 : vector<1x256xf32>
      %c2_i32 = arith.constant 2 : i32
      %175 = tpu.dynamic_rotate %174 by %c2_i32 dim 1 : vector<1x256xf32>, i32 -> vector<1x256xf32>
      %c1_48 = arith.constant 1 : index
      %c0_49 = arith.constant 0 : index
      %176 = vector.load %arg4[%c1_48, %c0_49] : memref<7x256xf32, #tpu.memory_space<vmem>>, vector<1x256xf32>
      %177 = arith.mulf %175, %176 : vector<1x256xf32>
      %178 = arith.addf %117, %177 : vector<1x256xf32>
      %cst_50 = arith.constant 0.000000e+00 : f32
      %179 = vector.broadcast %cst_50 : f32 to vector<1x256xf32>
      %c2_51 = arith.constant 2 : index
      %180 = memref.load %arg2[%c2_51] : memref<98xf32, #tpu.memory_space<smem>>
      %181 = vector.broadcast %180 : f32 to vector<1x256xf32>
      %182 = arith.mulf %181, %18 : vector<1x256xf32>
      %183 = arith.addf %179, %182 : vector<1x256xf32>
      %c9 = arith.constant 9 : index
      %184 = memref.load %arg2[%c9] : memref<98xf32, #tpu.memory_space<smem>>
      %185 = vector.broadcast %184 : f32 to vector<1x256xf32>
      %186 = arith.mulf %185, %21 : vector<1x256xf32>
      %187 = arith.addf %183, %186 : vector<1x256xf32>
      %c16 = arith.constant 16 : index
      %188 = memref.load %arg2[%c16] : memref<98xf32, #tpu.memory_space<smem>>
      %189 = vector.broadcast %188 : f32 to vector<1x256xf32>
      %190 = arith.mulf %189, %24 : vector<1x256xf32>
      %191 = arith.addf %187, %190 : vector<1x256xf32>
      %c23 = arith.constant 23 : index
      %192 = memref.load %arg2[%c23] : memref<98xf32, #tpu.memory_space<smem>>
      %193 = vector.broadcast %192 : f32 to vector<1x256xf32>
      %194 = arith.mulf %193, %26 : vector<1x256xf32>
      %195 = arith.addf %191, %194 : vector<1x256xf32>
      %c30 = arith.constant 30 : index
      %196 = memref.load %arg2[%c30] : memref<98xf32, #tpu.memory_space<smem>>
      %197 = vector.broadcast %196 : f32 to vector<1x256xf32>
      %198 = arith.mulf %197, %29 : vector<1x256xf32>
      %199 = arith.addf %195, %198 : vector<1x256xf32>
      %c37 = arith.constant 37 : index
      %200 = memref.load %arg2[%c37] : memref<98xf32, #tpu.memory_space<smem>>
      %201 = vector.broadcast %200 : f32 to vector<1x256xf32>
      %202 = arith.mulf %201, %32 : vector<1x256xf32>
      %203 = arith.addf %199, %202 : vector<1x256xf32>
      %c44 = arith.constant 44 : index
      %204 = memref.load %arg2[%c44] : memref<98xf32, #tpu.memory_space<smem>>
      %205 = vector.broadcast %204 : f32 to vector<1x256xf32>
      %206 = arith.mulf %205, %35 : vector<1x256xf32>
      %207 = arith.addf %203, %206 : vector<1x256xf32>
      %c51 = arith.constant 51 : index
      %208 = memref.load %arg2[%c51] : memref<98xf32, #tpu.memory_space<smem>>
      %209 = vector.broadcast %208 : f32 to vector<1x256xf32>
      %210 = arith.mulf %209, %38 : vector<1x256xf32>
      %211 = arith.addf %207, %210 : vector<1x256xf32>
      %c58 = arith.constant 58 : index
      %212 = memref.load %arg2[%c58] : memref<98xf32, #tpu.memory_space<smem>>
      %213 = vector.broadcast %212 : f32 to vector<1x256xf32>
      %214 = arith.mulf %213, %41 : vector<1x256xf32>
      %215 = arith.addf %211, %214 : vector<1x256xf32>
      %c65 = arith.constant 65 : index
      %216 = memref.load %arg2[%c65] : memref<98xf32, #tpu.memory_space<smem>>
      %217 = vector.broadcast %216 : f32 to vector<1x256xf32>
      %218 = arith.mulf %217, %44 : vector<1x256xf32>
      %219 = arith.addf %215, %218 : vector<1x256xf32>
      %c72 = arith.constant 72 : index
      %220 = memref.load %arg2[%c72] : memref<98xf32, #tpu.memory_space<smem>>
      %221 = vector.broadcast %220 : f32 to vector<1x256xf32>
      %222 = arith.mulf %221, %46 : vector<1x256xf32>
      %223 = arith.addf %219, %222 : vector<1x256xf32>
      %c79 = arith.constant 79 : index
      %224 = memref.load %arg2[%c79] : memref<98xf32, #tpu.memory_space<smem>>
      %225 = vector.broadcast %224 : f32 to vector<1x256xf32>
      %226 = arith.mulf %225, %49 : vector<1x256xf32>
      %227 = arith.addf %223, %226 : vector<1x256xf32>
      %c86 = arith.constant 86 : index
      %228 = memref.load %arg2[%c86] : memref<98xf32, #tpu.memory_space<smem>>
      %229 = vector.broadcast %228 : f32 to vector<1x256xf32>
      %230 = arith.mulf %229, %52 : vector<1x256xf32>
      %231 = arith.addf %227, %230 : vector<1x256xf32>
      %c93 = arith.constant 93 : index
      %232 = memref.load %arg2[%c93] : memref<98xf32, #tpu.memory_space<smem>>
      %233 = vector.broadcast %232 : f32 to vector<1x256xf32>
      %234 = arith.mulf %233, %55 : vector<1x256xf32>
      %235 = arith.addf %231, %234 : vector<1x256xf32>
      %c1_i32 = arith.constant 1 : i32
      %236 = tpu.dynamic_rotate %235 by %c1_i32 dim 1 : vector<1x256xf32>, i32 -> vector<1x256xf32>
      %c2_52 = arith.constant 2 : index
      %c0_53 = arith.constant 0 : index
      %237 = vector.load %arg4[%c2_52, %c0_53] : memref<7x256xf32, #tpu.memory_space<vmem>>, vector<1x256xf32>
      %238 = arith.mulf %236, %237 : vector<1x256xf32>
      %239 = arith.addf %178, %238 : vector<1x256xf32>
      %cst_54 = arith.constant 0.000000e+00 : f32
      %240 = vector.broadcast %cst_54 : f32 to vector<1x256xf32>
      %c3_55 = arith.constant 3 : index
      %241 = memref.load %arg2[%c3_55] : memref<98xf32, #tpu.memory_space<smem>>
      %242 = vector.broadcast %241 : f32 to vector<1x256xf32>
      %243 = arith.mulf %242, %18 : vector<1x256xf32>
      %244 = arith.addf %240, %243 : vector<1x256xf32>
      %c10 = arith.constant 10 : index
      %245 = memref.load %arg2[%c10] : memref<98xf32, #tpu.memory_space<smem>>
      %246 = vector.broadcast %245 : f32 to vector<1x256xf32>
      %247 = arith.mulf %246, %21 : vector<1x256xf32>
      %248 = arith.addf %244, %247 : vector<1x256xf32>
      %c17 = arith.constant 17 : index
      %249 = memref.load %arg2[%c17] : memref<98xf32, #tpu.memory_space<smem>>
      %250 = vector.broadcast %249 : f32 to vector<1x256xf32>
      %251 = arith.mulf %250, %24 : vector<1x256xf32>
      %252 = arith.addf %248, %251 : vector<1x256xf32>
      %c24 = arith.constant 24 : index
      %253 = memref.load %arg2[%c24] : memref<98xf32, #tpu.memory_space<smem>>
      %254 = vector.broadcast %253 : f32 to vector<1x256xf32>
      %255 = arith.mulf %254, %26 : vector<1x256xf32>
      %256 = arith.addf %252, %255 : vector<1x256xf32>
      %c31 = arith.constant 31 : index
      %257 = memref.load %arg2[%c31] : memref<98xf32, #tpu.memory_space<smem>>
      %258 = vector.broadcast %257 : f32 to vector<1x256xf32>
      %259 = arith.mulf %258, %29 : vector<1x256xf32>
      %260 = arith.addf %256, %259 : vector<1x256xf32>
      %c38 = arith.constant 38 : index
      %261 = memref.load %arg2[%c38] : memref<98xf32, #tpu.memory_space<smem>>
      %262 = vector.broadcast %261 : f32 to vector<1x256xf32>
      %263 = arith.mulf %262, %32 : vector<1x256xf32>
      %264 = arith.addf %260, %263 : vector<1x256xf32>
      %c45 = arith.constant 45 : index
      %265 = memref.load %arg2[%c45] : memref<98xf32, #tpu.memory_space<smem>>
      %266 = vector.broadcast %265 : f32 to vector<1x256xf32>
      %267 = arith.mulf %266, %35 : vector<1x256xf32>
      %268 = arith.addf %264, %267 : vector<1x256xf32>
      %c52 = arith.constant 52 : index
      %269 = memref.load %arg2[%c52] : memref<98xf32, #tpu.memory_space<smem>>
      %270 = vector.broadcast %269 : f32 to vector<1x256xf32>
      %271 = arith.mulf %270, %38 : vector<1x256xf32>
      %272 = arith.addf %268, %271 : vector<1x256xf32>
      %c59 = arith.constant 59 : index
      %273 = memref.load %arg2[%c59] : memref<98xf32, #tpu.memory_space<smem>>
      %274 = vector.broadcast %273 : f32 to vector<1x256xf32>
      %275 = arith.mulf %274, %41 : vector<1x256xf32>
      %276 = arith.addf %272, %275 : vector<1x256xf32>
      %c66 = arith.constant 66 : index
      %277 = memref.load %arg2[%c66] : memref<98xf32, #tpu.memory_space<smem>>
      %278 = vector.broadcast %277 : f32 to vector<1x256xf32>
      %279 = arith.mulf %278, %44 : vector<1x256xf32>
      %280 = arith.addf %276, %279 : vector<1x256xf32>
      %c73 = arith.constant 73 : index
      %281 = memref.load %arg2[%c73] : memref<98xf32, #tpu.memory_space<smem>>
      %282 = vector.broadcast %281 : f32 to vector<1x256xf32>
      %283 = arith.mulf %282, %46 : vector<1x256xf32>
      %284 = arith.addf %280, %283 : vector<1x256xf32>
      %c80 = arith.constant 80 : index
      %285 = memref.load %arg2[%c80] : memref<98xf32, #tpu.memory_space<smem>>
      %286 = vector.broadcast %285 : f32 to vector<1x256xf32>
      %287 = arith.mulf %286, %49 : vector<1x256xf32>
      %288 = arith.addf %284, %287 : vector<1x256xf32>
      %c87 = arith.constant 87 : index
      %289 = memref.load %arg2[%c87] : memref<98xf32, #tpu.memory_space<smem>>
      %290 = vector.broadcast %289 : f32 to vector<1x256xf32>
      %291 = arith.mulf %290, %52 : vector<1x256xf32>
      %292 = arith.addf %288, %291 : vector<1x256xf32>
      %c94 = arith.constant 94 : index
      %293 = memref.load %arg2[%c94] : memref<98xf32, #tpu.memory_space<smem>>
      %294 = vector.broadcast %293 : f32 to vector<1x256xf32>
      %295 = arith.mulf %294, %55 : vector<1x256xf32>
      %296 = arith.addf %292, %295 : vector<1x256xf32>
      %c3_56 = arith.constant 3 : index
      %c0_57 = arith.constant 0 : index
      %297 = vector.load %arg4[%c3_56, %c0_57] : memref<7x256xf32, #tpu.memory_space<vmem>>, vector<1x256xf32>
      %298 = arith.mulf %296, %297 : vector<1x256xf32>
      %299 = arith.addf %239, %298 : vector<1x256xf32>
      %cst_58 = arith.constant 0.000000e+00 : f32
      %300 = vector.broadcast %cst_58 : f32 to vector<1x256xf32>
      %c4_59 = arith.constant 4 : index
      %301 = memref.load %arg2[%c4_59] : memref<98xf32, #tpu.memory_space<smem>>
      %302 = vector.broadcast %301 : f32 to vector<1x256xf32>
      %303 = arith.mulf %302, %18 : vector<1x256xf32>
      %304 = arith.addf %300, %303 : vector<1x256xf32>
      %c11 = arith.constant 11 : index
      %305 = memref.load %arg2[%c11] : memref<98xf32, #tpu.memory_space<smem>>
      %306 = vector.broadcast %305 : f32 to vector<1x256xf32>
      %307 = arith.mulf %306, %21 : vector<1x256xf32>
      %308 = arith.addf %304, %307 : vector<1x256xf32>
      %c18 = arith.constant 18 : index
      %309 = memref.load %arg2[%c18] : memref<98xf32, #tpu.memory_space<smem>>
      %310 = vector.broadcast %309 : f32 to vector<1x256xf32>
      %311 = arith.mulf %310, %24 : vector<1x256xf32>
      %312 = arith.addf %308, %311 : vector<1x256xf32>
      %c25 = arith.constant 25 : index
      %313 = memref.load %arg2[%c25] : memref<98xf32, #tpu.memory_space<smem>>
      %314 = vector.broadcast %313 : f32 to vector<1x256xf32>
      %315 = arith.mulf %314, %26 : vector<1x256xf32>
      %316 = arith.addf %312, %315 : vector<1x256xf32>
      %c32 = arith.constant 32 : index
      %317 = memref.load %arg2[%c32] : memref<98xf32, #tpu.memory_space<smem>>
      %318 = vector.broadcast %317 : f32 to vector<1x256xf32>
      %319 = arith.mulf %318, %29 : vector<1x256xf32>
      %320 = arith.addf %316, %319 : vector<1x256xf32>
      %c39 = arith.constant 39 : index
      %321 = memref.load %arg2[%c39] : memref<98xf32, #tpu.memory_space<smem>>
      %322 = vector.broadcast %321 : f32 to vector<1x256xf32>
      %323 = arith.mulf %322, %32 : vector<1x256xf32>
      %324 = arith.addf %320, %323 : vector<1x256xf32>
      %c46 = arith.constant 46 : index
      %325 = memref.load %arg2[%c46] : memref<98xf32, #tpu.memory_space<smem>>
      %326 = vector.broadcast %325 : f32 to vector<1x256xf32>
      %327 = arith.mulf %326, %35 : vector<1x256xf32>
      %328 = arith.addf %324, %327 : vector<1x256xf32>
      %c53 = arith.constant 53 : index
      %329 = memref.load %arg2[%c53] : memref<98xf32, #tpu.memory_space<smem>>
      %330 = vector.broadcast %329 : f32 to vector<1x256xf32>
      %331 = arith.mulf %330, %38 : vector<1x256xf32>
      %332 = arith.addf %328, %331 : vector<1x256xf32>
      %c60 = arith.constant 60 : index
      %333 = memref.load %arg2[%c60] : memref<98xf32, #tpu.memory_space<smem>>
      %334 = vector.broadcast %333 : f32 to vector<1x256xf32>
      %335 = arith.mulf %334, %41 : vector<1x256xf32>
      %336 = arith.addf %332, %335 : vector<1x256xf32>
      %c67 = arith.constant 67 : index
      %337 = memref.load %arg2[%c67] : memref<98xf32, #tpu.memory_space<smem>>
      %338 = vector.broadcast %337 : f32 to vector<1x256xf32>
      %339 = arith.mulf %338, %44 : vector<1x256xf32>
      %340 = arith.addf %336, %339 : vector<1x256xf32>
      %c74 = arith.constant 74 : index
      %341 = memref.load %arg2[%c74] : memref<98xf32, #tpu.memory_space<smem>>
      %342 = vector.broadcast %341 : f32 to vector<1x256xf32>
      %343 = arith.mulf %342, %46 : vector<1x256xf32>
      %344 = arith.addf %340, %343 : vector<1x256xf32>
      %c81 = arith.constant 81 : index
      %345 = memref.load %arg2[%c81] : memref<98xf32, #tpu.memory_space<smem>>
      %346 = vector.broadcast %345 : f32 to vector<1x256xf32>
      %347 = arith.mulf %346, %49 : vector<1x256xf32>
      %348 = arith.addf %344, %347 : vector<1x256xf32>
      %c88 = arith.constant 88 : index
      %349 = memref.load %arg2[%c88] : memref<98xf32, #tpu.memory_space<smem>>
      %350 = vector.broadcast %349 : f32 to vector<1x256xf32>
      %351 = arith.mulf %350, %52 : vector<1x256xf32>
      %352 = arith.addf %348, %351 : vector<1x256xf32>
      %c95 = arith.constant 95 : index
      %353 = memref.load %arg2[%c95] : memref<98xf32, #tpu.memory_space<smem>>
      %354 = vector.broadcast %353 : f32 to vector<1x256xf32>
      %355 = arith.mulf %354, %55 : vector<1x256xf32>
      %356 = arith.addf %352, %355 : vector<1x256xf32>
      %c255_i32 = arith.constant 255 : i32
      %357 = tpu.dynamic_rotate %356 by %c255_i32 dim 1 : vector<1x256xf32>, i32 -> vector<1x256xf32>
      %c4_60 = arith.constant 4 : index
      %c0_61 = arith.constant 0 : index
      %358 = vector.load %arg4[%c4_60, %c0_61] : memref<7x256xf32, #tpu.memory_space<vmem>>, vector<1x256xf32>
      %359 = arith.mulf %357, %358 : vector<1x256xf32>
      %360 = arith.addf %299, %359 : vector<1x256xf32>
      %cst_62 = arith.constant 0.000000e+00 : f32
      %361 = vector.broadcast %cst_62 : f32 to vector<1x256xf32>
      %c5_63 = arith.constant 5 : index
      %362 = memref.load %arg2[%c5_63] : memref<98xf32, #tpu.memory_space<smem>>
      %363 = vector.broadcast %362 : f32 to vector<1x256xf32>
      %364 = arith.mulf %363, %18 : vector<1x256xf32>
      %365 = arith.addf %361, %364 : vector<1x256xf32>
      %c12 = arith.constant 12 : index
      %366 = memref.load %arg2[%c12] : memref<98xf32, #tpu.memory_space<smem>>
      %367 = vector.broadcast %366 : f32 to vector<1x256xf32>
      %368 = arith.mulf %367, %21 : vector<1x256xf32>
      %369 = arith.addf %365, %368 : vector<1x256xf32>
      %c19 = arith.constant 19 : index
      %370 = memref.load %arg2[%c19] : memref<98xf32, #tpu.memory_space<smem>>
      %371 = vector.broadcast %370 : f32 to vector<1x256xf32>
      %372 = arith.mulf %371, %24 : vector<1x256xf32>
      %373 = arith.addf %369, %372 : vector<1x256xf32>
      %c26 = arith.constant 26 : index
      %374 = memref.load %arg2[%c26] : memref<98xf32, #tpu.memory_space<smem>>
      %375 = vector.broadcast %374 : f32 to vector<1x256xf32>
      %376 = arith.mulf %375, %26 : vector<1x256xf32>
      %377 = arith.addf %373, %376 : vector<1x256xf32>
      %c33 = arith.constant 33 : index
      %378 = memref.load %arg2[%c33] : memref<98xf32, #tpu.memory_space<smem>>
      %379 = vector.broadcast %378 : f32 to vector<1x256xf32>
      %380 = arith.mulf %379, %29 : vector<1x256xf32>
      %381 = arith.addf %377, %380 : vector<1x256xf32>
      %c40 = arith.constant 40 : index
      %382 = memref.load %arg2[%c40] : memref<98xf32, #tpu.memory_space<smem>>
      %383 = vector.broadcast %382 : f32 to vector<1x256xf32>
      %384 = arith.mulf %383, %32 : vector<1x256xf32>
      %385 = arith.addf %381, %384 : vector<1x256xf32>
      %c47 = arith.constant 47 : index
      %386 = memref.load %arg2[%c47] : memref<98xf32, #tpu.memory_space<smem>>
      %387 = vector.broadcast %386 : f32 to vector<1x256xf32>
      %388 = arith.mulf %387, %35 : vector<1x256xf32>
      %389 = arith.addf %385, %388 : vector<1x256xf32>
      %c54 = arith.constant 54 : index
      %390 = memref.load %arg2[%c54] : memref<98xf32, #tpu.memory_space<smem>>
      %391 = vector.broadcast %390 : f32 to vector<1x256xf32>
      %392 = arith.mulf %391, %38 : vector<1x256xf32>
      %393 = arith.addf %389, %392 : vector<1x256xf32>
      %c61 = arith.constant 61 : index
      %394 = memref.load %arg2[%c61] : memref<98xf32, #tpu.memory_space<smem>>
      %395 = vector.broadcast %394 : f32 to vector<1x256xf32>
      %396 = arith.mulf %395, %41 : vector<1x256xf32>
      %397 = arith.addf %393, %396 : vector<1x256xf32>
      %c68 = arith.constant 68 : index
      %398 = memref.load %arg2[%c68] : memref<98xf32, #tpu.memory_space<smem>>
      %399 = vector.broadcast %398 : f32 to vector<1x256xf32>
      %400 = arith.mulf %399, %44 : vector<1x256xf32>
      %401 = arith.addf %397, %400 : vector<1x256xf32>
      %c75 = arith.constant 75 : index
      %402 = memref.load %arg2[%c75] : memref<98xf32, #tpu.memory_space<smem>>
      %403 = vector.broadcast %402 : f32 to vector<1x256xf32>
      %404 = arith.mulf %403, %46 : vector<1x256xf32>
      %405 = arith.addf %401, %404 : vector<1x256xf32>
      %c82 = arith.constant 82 : index
      %406 = memref.load %arg2[%c82] : memref<98xf32, #tpu.memory_space<smem>>
      %407 = vector.broadcast %406 : f32 to vector<1x256xf32>
      %408 = arith.mulf %407, %49 : vector<1x256xf32>
      %409 = arith.addf %405, %408 : vector<1x256xf32>
      %c89 = arith.constant 89 : index
      %410 = memref.load %arg2[%c89] : memref<98xf32, #tpu.memory_space<smem>>
      %411 = vector.broadcast %410 : f32 to vector<1x256xf32>
      %412 = arith.mulf %411, %52 : vector<1x256xf32>
      %413 = arith.addf %409, %412 : vector<1x256xf32>
      %c96 = arith.constant 96 : index
      %414 = memref.load %arg2[%c96] : memref<98xf32, #tpu.memory_space<smem>>
      %415 = vector.broadcast %414 : f32 to vector<1x256xf32>
      %416 = arith.mulf %415, %55 : vector<1x256xf32>
      %417 = arith.addf %413, %416 : vector<1x256xf32>
      %c254_i32 = arith.constant 254 : i32
      %418 = tpu.dynamic_rotate %417 by %c254_i32 dim 1 : vector<1x256xf32>, i32 -> vector<1x256xf32>
      %c5_64 = arith.constant 5 : index
      %c0_65 = arith.constant 0 : index
      %419 = vector.load %arg4[%c5_64, %c0_65] : memref<7x256xf32, #tpu.memory_space<vmem>>, vector<1x256xf32>
      %420 = arith.mulf %418, %419 : vector<1x256xf32>
      %421 = arith.addf %360, %420 : vector<1x256xf32>
      %cst_66 = arith.constant 0.000000e+00 : f32
      %422 = vector.broadcast %cst_66 : f32 to vector<1x256xf32>
      %c6_67 = arith.constant 6 : index
      %423 = memref.load %arg2[%c6_67] : memref<98xf32, #tpu.memory_space<smem>>
      %424 = vector.broadcast %423 : f32 to vector<1x256xf32>
      %425 = arith.mulf %424, %18 : vector<1x256xf32>
      %426 = arith.addf %422, %425 : vector<1x256xf32>
      %c13 = arith.constant 13 : index
      %427 = memref.load %arg2[%c13] : memref<98xf32, #tpu.memory_space<smem>>
      %428 = vector.broadcast %427 : f32 to vector<1x256xf32>
      %429 = arith.mulf %428, %21 : vector<1x256xf32>
      %430 = arith.addf %426, %429 : vector<1x256xf32>
      %c20 = arith.constant 20 : index
      %431 = memref.load %arg2[%c20] : memref<98xf32, #tpu.memory_space<smem>>
      %432 = vector.broadcast %431 : f32 to vector<1x256xf32>
      %433 = arith.mulf %432, %24 : vector<1x256xf32>
      %434 = arith.addf %430, %433 : vector<1x256xf32>
      %c27 = arith.constant 27 : index
      %435 = memref.load %arg2[%c27] : memref<98xf32, #tpu.memory_space<smem>>
      %436 = vector.broadcast %435 : f32 to vector<1x256xf32>
      %437 = arith.mulf %436, %26 : vector<1x256xf32>
      %438 = arith.addf %434, %437 : vector<1x256xf32>
      %c34 = arith.constant 34 : index
      %439 = memref.load %arg2[%c34] : memref<98xf32, #tpu.memory_space<smem>>
      %440 = vector.broadcast %439 : f32 to vector<1x256xf32>
      %441 = arith.mulf %440, %29 : vector<1x256xf32>
      %442 = arith.addf %438, %441 : vector<1x256xf32>
      %c41 = arith.constant 41 : index
      %443 = memref.load %arg2[%c41] : memref<98xf32, #tpu.memory_space<smem>>
      %444 = vector.broadcast %443 : f32 to vector<1x256xf32>
      %445 = arith.mulf %444, %32 : vector<1x256xf32>
      %446 = arith.addf %442, %445 : vector<1x256xf32>
      %c48 = arith.constant 48 : index
      %447 = memref.load %arg2[%c48] : memref<98xf32, #tpu.memory_space<smem>>
      %448 = vector.broadcast %447 : f32 to vector<1x256xf32>
      %449 = arith.mulf %448, %35 : vector<1x256xf32>
      %450 = arith.addf %446, %449 : vector<1x256xf32>
      %c55 = arith.constant 55 : index
      %451 = memref.load %arg2[%c55] : memref<98xf32, #tpu.memory_space<smem>>
      %452 = vector.broadcast %451 : f32 to vector<1x256xf32>
      %453 = arith.mulf %452, %38 : vector<1x256xf32>
      %454 = arith.addf %450, %453 : vector<1x256xf32>
      %c62 = arith.constant 62 : index
      %455 = memref.load %arg2[%c62] : memref<98xf32, #tpu.memory_space<smem>>
      %456 = vector.broadcast %455 : f32 to vector<1x256xf32>
      %457 = arith.mulf %456, %41 : vector<1x256xf32>
      %458 = arith.addf %454, %457 : vector<1x256xf32>
      %c69 = arith.constant 69 : index
      %459 = memref.load %arg2[%c69] : memref<98xf32, #tpu.memory_space<smem>>
      %460 = vector.broadcast %459 : f32 to vector<1x256xf32>
      %461 = arith.mulf %460, %44 : vector<1x256xf32>
      %462 = arith.addf %458, %461 : vector<1x256xf32>
      %c76 = arith.constant 76 : index
      %463 = memref.load %arg2[%c76] : memref<98xf32, #tpu.memory_space<smem>>
      %464 = vector.broadcast %463 : f32 to vector<1x256xf32>
      %465 = arith.mulf %464, %46 : vector<1x256xf32>
      %466 = arith.addf %462, %465 : vector<1x256xf32>
      %c83 = arith.constant 83 : index
      %467 = memref.load %arg2[%c83] : memref<98xf32, #tpu.memory_space<smem>>
      %468 = vector.broadcast %467 : f32 to vector<1x256xf32>
      %469 = arith.mulf %468, %49 : vector<1x256xf32>
      %470 = arith.addf %466, %469 : vector<1x256xf32>
      %c90 = arith.constant 90 : index
      %471 = memref.load %arg2[%c90] : memref<98xf32, #tpu.memory_space<smem>>
      %472 = vector.broadcast %471 : f32 to vector<1x256xf32>
      %473 = arith.mulf %472, %52 : vector<1x256xf32>
      %474 = arith.addf %470, %473 : vector<1x256xf32>
      %c97 = arith.constant 97 : index
      %475 = memref.load %arg2[%c97] : memref<98xf32, #tpu.memory_space<smem>>
      %476 = vector.broadcast %475 : f32 to vector<1x256xf32>
      %477 = arith.mulf %476, %55 : vector<1x256xf32>
      %478 = arith.addf %474, %477 : vector<1x256xf32>
      %c253_i32 = arith.constant 253 : i32
      %479 = tpu.dynamic_rotate %478 by %c253_i32 dim 1 : vector<1x256xf32>, i32 -> vector<1x256xf32>
      %c6_68 = arith.constant 6 : index
      %c0_69 = arith.constant 0 : index
      %480 = vector.load %arg4[%c6_68, %c0_69] : memref<7x256xf32, #tpu.memory_space<vmem>>, vector<1x256xf32>
      %481 = arith.mulf %479, %480 : vector<1x256xf32>
      %482 = arith.addf %421, %481 : vector<1x256xf32>
      %483 = arith.negf %482 : vector<1x256xf32>
      %484 = math.exp %483 : vector<1x256xf32>
      %cst_70 = arith.constant 1.000000e+00 : f32
      %485 = vector.broadcast %cst_70 : f32 to vector<1x256xf32>
      %486 = arith.addf %485, %484 : vector<1x256xf32>
      %487 = arith.divf %485, %486 : vector<1x256xf32>
      %c0_71 = arith.constant 0 : index
      %c0_72 = arith.constant 0 : index
      %c0_73 = arith.constant 0 : index
      %488 = vector.load %arg6[%c0_71, %c0_72, %c0_73] : memref<1x1x256xf32, #tpu.memory_space<vmem>>, vector<1x1x256xf32>
      %489 = vector.shape_cast %488 : vector<1x1x256xf32> to vector<1x256xf32>
      %490 = vector.shape_cast %487 : vector<1x256xf32> to vector<1x1x256xf32>
      tpu.vector_store %arg6[%c0_71, %c0_72, %c0_73], %490 {strides = array<i32>} : memref<1x1x256xf32, #tpu.memory_space<vmem>>, vector<1x1x256xf32>,
    } else {
    }
    return
  }
  func.func @transform_0(%arg0: i32, %arg1: i32) -> i32 {
    %c0_i32 = arith.constant 0 : i32
    %c0_i32_0 = arith.constant 0 : i32
    return %c0_i32 : i32
  }
  func.func @transform_1(%arg0: i32, %arg1: i32) -> (i32, i32) {
    %c0_i32 = arith.constant 0 : i32
    %c0_i32_0 = arith.constant 0 : i32
    %c0_i32_1 = arith.constant 0 : i32
    return %c0_i32, %c0_i32_0 : i32, i32
  }
  func.func @transform_2(%arg0: i32, %arg1: i32) -> (i32, i32) {
    %c0_i32 = arith.constant 0 : i32
    %c0_i32_0 = arith.constant 0 : i32
    %c0_i32_1 = arith.constant 0 : i32
    return %c0_i32, %c0_i32_0 : i32, i32
  }
  func.func @transform_3(%arg0: i32, %arg1: i32) -> (i32, i32, i32) {
    %c0_i32 = arith.constant 0 : i32
    %c0_i32_0 = arith.constant 0 : i32
    return %arg0, %arg1, %c0_i32 : i32, i32, i32
  }
  func.func @transform_4(%arg0: i32, %arg1: i32) -> (i32, i32, i32) {
    %c0_i32 = arith.constant 0 : i32
    %c0_i32_0 = arith.constant 0 : i32
    %c0_i32_1 = arith.constant 0 : i32
    return %arg0, %c0_i32, %c0_i32_0 : i32, i32, i32
  }
}

</mosaic_0001>

<bundles_post_ra>
// kernel: tpu_custom_call.1
= control target key start
LH: loop header
LB: loop body
LE: loop exit
PB: predicated region body
PF: predicated region fallthrough
CT: control target
= control target key end

     0   :  { %s3135_s0 = inlined_call_operand.hbm [shape: f32[98], index: 0, kind: input, shape index: {}]   ;;  %s3136_s1 = inlined_call_operand.hbm [shape: f32[7,256], index: 1, kind: input, shape index: {}]   ;;  %s3137_s2 = inlined_call_operand.hbm [shape: f32[7,256], index: 2, kind: input, shape index: {}]   ;;  %s3138_s3 = inlined_call_operand.hbm [shape: f32[2,4,256], index: 3, kind: input, shape index: {}]   ;;  %s3139_s4 = inlined_call_operand.hbm [shape: f32[2,1,256], index: 4, kind: output, shape index: {}]  }
   0x1   :  { %3165 = sst [smem:[#allocation35_spill]] %s3135_s0 }
   0x2   :  { %3166 = sst [smem:[#allocation36_spill]] %s3136_s1 }
   0x3   :  { %3167 = sst [smem:[#allocation37_spill]] %s3137_s2 }
   0x4   :  { %3168 = sst [smem:[#allocation38_spill]] %s3138_s3 }
   0x5   :  { %9 = vsyncpa [#allocation7], 0 }
   0x6   :  { %10 = vsyncpa [#allocation5], 0 }
   0x7   :  { %11 = vsyncpa [#allocation10], 0 }
   0x8   :  { %12 = vsyncpa [#allocation6], 0 }
   0x9   :  { %14 = vsyncpa [#allocation6 + $0x1], 0  ;;  %s1938_s15 = smov 0   ;;  %s1940_s16 = smov 0  }
   0xa   :  { %s1942_s17 = smov 0   ;;  %s1944_s18 = smov 0  }
   0xb   :  { %s1946_s19 = smov 0   ;;  %s1948_s20 = smov 0  }
   0xc LB: > { %3169 = sst [smem:[#allocation18_spill]] %s1880_s16  ;;  %s1969_s21 = sadd.s32 4294967295, %s1896_s20   ;;  %s1896_s20 = sphi %s1948_s20, %s20_s20   ;;  %s1892_s19 = sphi %s1946_s19, %s3291_s19   ;;  %s1888_s18 = sphi %s1944_s18, %s3290_s18   ;;  %s1884_s17 = sphi %s1942_s17, %s3289_s17   ;;  %s1880_s16 = sphi %s1940_s16, %s3288_s16   ;;  %s1876_s15 = sphi %s1938_s15, %s3287_s15  }
   0xd   : > { %3170 = sst [smem:[#allocation19_spill]] %s1884_s17  ;;  %s1465_s22 = sadd.s32 4294967294, %s1896_s20  }
   0xe   : > { %3171 = sst [smem:[#allocation20_spill]] %s1892_s19  ;;  %p117_p0 = scmp.ne.s32.totalorder %s1880_s16, %s1876_s15 }
   0xf   : > { %3172 = sst [smem:[#allocation21_spill]] %s1896_s20  ;;  %p118_p1 = scmp.eq.s32.totalorder %s1969_s21, 0 }
  0x10   : > { %p141_p2 = scmp.eq.s32.totalorder %s1969_s21, 1  ;;  %p147_p3 = scmp.eq.s32.totalorder %s1465_s22, 1 }
  0x11   : > { %p1978_p4 = por %p118_p1, %p117_p0  ;;  %p1466_p5 = scmp.ge.s32.totalorder %s1896_s20, 1 }
  0x12   : > { %p1983_p6 = por %p147_p3, %p117_p0  ;;  %p154_p7 = scmp.lt.s32.totalorder %s1896_s20, 3 }
  0x13   : > { %s3176_s1 = sld [smem:[#allocation36_spill]]  ;;  %p1470_p9 = scmp.ge.s32.totalorder %s1896_s20, 2 }
  0x14   : > { %s3174_s24 = scalar_select %p1983_p6, 1, 0 }
  0x15   : > { %p1991_p8 = pnand %p1466_p5, %p154_p7  ;;  %s1898_s29 = smov [#allocation8]  }
  0x16   : > { %3175 = sst [smem:[#allocation22_spill]] %s3174_s24  ;;  %s178_s30 = sshll.u32 %s1898_s29, 4  ;;  %s179_s30 = int_to_ptr.vmem [resolvable:$true] %s178_s30 }
  0x17   : > { %p1600_p10 = pneg %p1991_p8  ;;  %s3178_s0 = sld [smem:[#allocation35_spill]] }
  0x18   : > { %s1899_s8 = smov [#allocation4]   ;;  %s3179_s2 = sld [smem:[#allocation37_spill]] }
  0x19   : > { %s176_s27 = sshll.u32 %s3176_s1, 4  ;;  %p1601_p11 = pnand %p1600_p10, %p118_p1  ;;  %s177_s27 = int_to_ptr.hbm [resolvable:$true] %s176_s27 }
  0x1a   : > { %s1900_s12 = smov [#allocation9]   ;;  %s32_s14 = sadd.s32 1, %s1892_s19 }
  0x1b   : > { %1606 = dma.hbm_to_vmem [thread:$0]  (!%p1601_p11), %s177_s27, 256, %s179_s30, [#allocation5]  }
  0x1c   : > { %s190_s13 = sshll.u32 %s1900_s12, 4  ;;  %p111_p12 = scmp.ne.s32.totalorder %s1884_s17, %s1880_s16  ;;  %s191_s13 = int_to_ptr.vmem [resolvable:$true] %s190_s13 }
  0x1d   : > { %s166_s7 = sshll.u32 %s3178_s0, 4  ;;  %p34_p13 = scmp.ge.s32.totalorder %s32_s14, 2  ;;  %s167_s7 = int_to_ptr.hbm [resolvable:$true] %s166_s7 }
  0x1e   : > { %1603 = dma.hbm_to_smem (!%p1601_p11), %s167_s7, 16, %s1899_s8, [#allocation7]  }
  0x1f   : > { %s188_s11 = sshll.u32 %s3179_s2, 4  ;;  %p112_p0 = scmp.eq.s32.totalorder %s1896_s20, 0  ;;  %s189_s11 = int_to_ptr.hbm [resolvable:$true] %s188_s11 }
  0x20   : > { %1609 = dma.hbm_to_vmem [thread:$0]  (!%p1601_p11), %s189_s11, 256, %s191_s13, [#allocation10]  }
  0x21   : > { %s104_s22 = sadd.s32 1, %s1884_s17  ;;  %p2013_p3 = por %p141_p2, %p111_p12 }
  0x22   : > { %s3293_s14 = smov (%p34_p13, %s32_s14), 0  ;;  %p2019_p5 = por %p112_p0, %p111_p12 }
  0x23   : > { %3181 = sst [smem:[#allocation23_spill]] %s3293_s14  ;;  %p1621_p7 = scmp.lt.s32.totalorder %s1896_s20, 2 }
  0x24   : > { %s99_s27 = ssub.s32 %s1892_s19, %s3293_s14  ;;  %s201_s29 = sand.u32 1, %s1896_s20  }
  0x25   : > { %p102_p10 = scmp.eq.s32.totalorder %s99_s27, 0  ;;  %s203_s30 = sand.u32 1, %s1884_s17  }
  0x26   : > { %s1471_s5 = sshll.u32 %s203_s30, 3  ;;  %s1583_s6 = sshll.u32 %s1892_s19, 3 }
  0x27   : > { %s2030_s7 = scalar_select %p102_p10, %s1884_s17, %s104_s22  }
  0x28   : > { %s3184_s3 = sld [smem:[#allocation38_spill]]  ;;  %s205_s12 = scalar_lea.vmem [#allocation11], %s1471_s5 }
  0x29   : > { %3183 = sst [smem:[#allocation24_spill]] %s2030_s7  ;;  %s216_s13 = sshll.u32 %s205_s12, 4  ;;  %s217_s13 = int_to_ptr.vmem [resolvable:$true] %s216_s13 }
  0x2a   : > { %p1611_p2 = pnand %p1621_p7, %p2019_p5  ;;  %s202_s0 = scalar_lea.sflag [#allocation5], %s201_s29 }
  0x2c   : > { %225 = sbr.rel (%p1991_p8) target bundleno = 511 (0x1ff), region = 36 }
  0x2e   : > { %s212_s10 = scalar_lea.hbm %s3184_s3, %s1583_s6 }
  0x2f   : > { %s214_s11 = sshll.u32 %s212_s10, 4  ;;  %s215_s11 = int_to_ptr.hbm [resolvable:$true] %s214_s11 }
  0x30   : > { %1613 = dma.hbm_to_vmem [thread:$0]  (!%p1611_p2), %s215_s11, 128, %s217_s13, %s202_s0  }
  0x31   : > { %1855 = dma.done.wait (%p118_p1), [#allocation7], 16  }
  0x32   : > { %1857 = vsyncadd (%p118_p1), [#allocation7], 4294967280 }
  0x33   : > { %1859 = dma.done.wait (%p118_p1), [#allocation5], 256  }
  0x34   : > { %1861 = vsyncadd (%p118_p1), [#allocation5], 4294967040 }
  0x35   : > { %1863 = dma.done.wait (%p118_p1), [#allocation10], 256  }
  0x36   : > { %1865 = vsyncadd (%p118_p1), [#allocation10], 4294967040  ;;  %s242_s0 = sand.u32 1, %s1969_s21   ;;  %s2055_s28 = sand.u32 1, %s1880_s16  }
  0x37   : > { %s1478_s22 = sshll.u32 %s2055_s28, 3  ;;  %s243_s26 = scalar_lea.sflag [#allocation5], %s242_s0 }
  0x38   : > { %s246_s27 = scalar_lea.vmem [#allocation11], %s1478_s22 }
  0x39   : > { %1867 = dma.done.wait (%p1978_p4), %s243_s26, 128  }
  0x3a   : > { %1869 = vsyncadd (%p1978_p4), %s243_s26, 4294967168 }
  0x3b   : > { %252 = sfence }
  0x3c   : > { %v273_v0 = vld [vmem:[%s246_s27] sm:$0xff]  ;;  %vm280_vm0 = vcmask 1043456   ;;  %v324_v15 = vlaneseq  ;;  %vm321_vm1 = vcmask 1040384   ;;  %v3185_v27 = vmov 0  ;;  %s1901_s21 = smov 32   ;;  %s1902_s23 = smov 48  }
  0x3d   : > { %275 = vst [vmem:[#allocation1] ss:$2 sm:$0xff] %v273_v0  ;;  %s1903_s29 = smov 16   ;;  %s1904_s30 = smov 112  }
  0x3e   : > { %vm2067_vm2 = vcmp.lt.s32.totalorder %v324_v15, 256  ;;  %s1905_s5 = smov 96   ;;  %s1906_s6 = smov 80   ;;  %v2112_v47 = vand.u32 127, %v324_v15 }
  0x3f   : > { %v3186_v27 = vsel %vm2067_vm2, 4294967295, %v3185_v27  ;;  %s2081_s8 = sld [smem:[#allocation4 + $0xe]]  ;;  %v421_v48 = vld [vmem:[#allocation8 + $0x3] ss:$8 sm:$0x3] }
  0x40   : > { %3187 = vst [vmem:[#allocation25_spill] sm:$0xff] %v3186_v27  ;;  %s2083_s9 = sld [smem:[#allocation4 + $0xf]]  ;;  %v2120_v49 = vld [vmem:[#allocation8 + $0x2] ss:$8 sm:$0x3]  ;;  %vm408_vm3 = vcmp.lt.s32.totalorder %v2112_v47, 16 }
  0x41   : > { %s2085_s10 = sld [smem:[#allocation4 + $0x10]]  ;;  %v3144_v53 = vperm.slane %v2120_v49, 0  ;;  %v2138_v57 = vld [vmem:[#allocation8 + $0x1] ss:$8 sm:$0x3]  ;;  %v3143_v58 = vperm.slane %v2120_v49, 1 }
  0x42   : > { %s2087_s11 = sld [smem:[#allocation4 + $0x11]]  ;;  %vm392_vm4 = vcmp.lt.s32.totalorder %v2112_v47, 32  ;;  %vm377_vm5 = vcmp.lt.s32.totalorder %v2112_v47, 48  ;;  %vm427_vm6 = vcmp.lt.s32.totalorder %v2112_v47, 112  ;;  %vm443_vm7 = vcmp.lt.s32.totalorder %v2112_v47, 96 }
  0x43   : > { %s2089_s12 = sld [smem:[#allocation4 + $0x12]]  ;;  %vm459_vm8 = vcmp.lt.s32.totalorder %v2112_v47, 80  ;;  %vm730_vm9 = vcmp.lt.s32.totalorder %v2112_v47, 2  ;;  %vm621_vm10 = vcmp.lt.s32.totalorder %v2112_v47, 3  ;;  %vm840_vm11 = vcmp.lt.s32.totalorder %v2112_v47, 1 }
  0x44   : > { %v276_v1 = vld.sshfl [vmem:[#allocation1] sm:$0xff pattern:$0x75316420]  ;;  %v277_v2 = vld.sshfl [vmem:[#allocation1 + $0x8] sm:$0xff pattern:$0x75316420] }
  0x45   : > { %v281_v3 = vsel %vm280_vm0, %v276_v1, -inf  ;;  %v288_v4 = vsel %vm280_vm0, %v277_v2, -inf  ;;  %295 = vst [vmem:[#allocation1] ss:$2 sm:$0xff] %v273_v0  ;;  %s2091_s13 = sld [smem:[#allocation4 + $0x13]]  ;;  %v538_v54 = vstv %s2081_s8  ;;  %v3146_v1 = vperm.slane %v2138_v57, 0 }
  0x46   : > { %v282_v5 = vrot.slane %v281_v3, 4  ;;  %v289_v6 = vrot.slane %v288_v4, 4  ;;  %s2093_s0 = sld [smem:[#allocation4 + $0x14]]  ;;  %v647_v55 = vstv %s2083_s9  ;;  %v3145_v2 = vperm.slane %v2138_v57, 1 }
  0x47   : > { %s2095_s22 = sld [smem:[#allocation4 + $0x7]]  ;;  %v757_v56 = vstv %s2085_s10  ;;  %vm1053_vm12 = vcmp.lt.s32.totalorder %v2112_v47, 127  ;;  %vm1273_vm13 = vcmp.lt.s32.totalorder %v2112_v47, 125  ;;  %vm1163_vm14 = vcmp.lt.s32.totalorder %v2112_v47, 126 }
  0x48   : > { %v283_v7 = vmax.f32 %v281_v3, %v282_v5  ;;  %v290_v8 = vmax.f32 %v288_v4, %v289_v6  ;;  %s2097_s26 = sld [smem:[#allocation4 + $0x8]]  ;;  %v867_v59 = vstv %s2087_s11  ;;  %v2160_v5 = vld [vmem:[#allocation8] ss:$8 sm:$0x3] }
  0x49   : > { %s2099_s27 = sld [smem:[#allocation4 + $0x9]]  ;;  %v970_v60 = vstv %s2089_s12 }
  0x4a   : > { %v284_v9 = vrot.slane %v283_v7, 2  ;;  %v291_v10 = vrot.slane %v290_v8, 2  ;;  %s2116_s1 = sld [smem:[#allocation4 + $0x2]] }
  0x4b   : > { %s2118_s2 = sld [smem:[#allocation4 + $0x3]]  ;;  %v1080_v62 = vstv %s2091_s13 }
  0x4c   : > { %v285_v11 = vmax.f32 %v283_v7, %v284_v9  ;;  %v292_v12 = vmax.f32 %v290_v8, %v291_v10  ;;  %v296_v13 = vld.sshfl [vmem:[#allocation1] sm:$0xff pattern:$0x75316420]  ;;  %v297_v14 = vld.sshfl [vmem:[#allocation1 + $0x8] sm:$0xff pattern:$0x75316420]  ;;  %v1190_v63 = vstv %s2093_s0 }
  0x4d   : > { %v300_v16 = vsel %vm280_vm0, %v296_v13, 0.0  ;;  %v307_v17 = vsel %vm280_vm0, %v297_v14, 0.0  ;;  %s2122_s3 = sld [smem:[#allocation4 + $0x15]]  ;;  %v532_v3 = vstv %s2095_s22 }
  0x4e   : > { %v286_v18 = vrot.slane %v285_v11, 1  ;;  %v293_v19 = vrot.slane %v292_v12, 1  ;;  %v301_v20 = vrot.slane %v300_v16, 4  ;;  %v308_v21 = vrot.slane %v307_v17, 4  ;;  %s2125_s14 = sld [smem:[#allocation4 + $0x4]] }
  0x4f   : > { %s2132_s19 = sld [smem:[#allocation4 + $0x5]]  ;;  %v641_v4 = vstv %s2097_s26  ;;  %v751_v9 = vstv %s2099_s27 }
  0x50   : > { %v287_v22 = vmax.f32 %v285_v11, %v286_v18  ;;  %v294_v23 = vmax.f32 %v292_v12, %v293_v19  ;;  %v302_v24 = vadd.f32 %v301_v20, %v300_v16  ;;  %v309_v25 = vadd.f32 %v308_v21, %v307_v17  ;;  %s2140_s7 = sld [smem:[#allocation4 + $0x6]] }
  0x51   : > { %s2147_s17 = sld [smem:[#allocation4 + $0x16]]  ;;  %v3148_v16 = vperm.slane %v2160_v5, 0  ;;  %v3147_v17 = vperm.slane %v2160_v5, 1  ;;  %v745_v20 = vstv %s2116_s1  ;;  %v855_v21 = vstv %s2118_s2 }
  0x52   : > { %v320_v26 = vrot.slane %v294_v23, 7  ;;  %v303_v28 = vrot.slane %v302_v24, 2  ;;  %v310_v29 = vrot.slane %v309_v25, 2  ;;  %s2154_s8 = sld [smem:[#allocation4 + $0x17]] }
  0x53   : > { %v544_v15 = vstv %s2122_s3  ;;  %s2172_s9 = sld [smem:[#allocation4 + $0x1c]] }
  0x54   : > { %v322_v30 = vsel %vm321_vm1, %v287_v22, %v320_v26  ;;  %v304_v31 = vadd.f32 %v303_v28, %v302_v24  ;;  %v311_v32 = vadd.f32 %v310_v29, %v309_v25  ;;  %s2178_s10 = sld [smem:[#allocation4 + $0x1d]]  ;;  %v958_v22 = vstv %s2125_s14 }
  0x55   : > { %328 = vst.msk [vmem:[#allocation2] sm:$0x3] %vm2067_vm2, %v322_v30  ;;  %s2186_s11 = sld [smem:[#allocation4 + $0x23]] }
  0x56   : > { %v305_v33 = vrot.slane %v304_v31, 1  ;;  %v312_v34 = vrot.slane %v311_v32, 1  ;;  %s2195_s3 = sld [smem:[#allocation4 + $0x2a]] }
  0x57   : > { %s2205_s12 = sld [smem:[#allocation4 + $0x24]] }
  0x58   : > { %v306_v35 = vadd.f32 %v305_v33, %v304_v31  ;;  %v313_v36 = vadd.f32 %v312_v34, %v311_v32  ;;  %s2213_s13 = sld [smem:[#allocation4 + $0x31]] }
  0x59   : > { %s2225_s0 = sld [smem:[#allocation4 + $0x1e]] }
  0x5a   : > { %v331_v37 = vrot.slane %v313_v36, 7  ;;  %v653_v36 = vstv %s2147_s17  ;;  %s2236_s17 = sld [smem:[#allocation4 + $0x2b]] }
  0x5b   : > { %s2327_s22 = sld [smem:[#allocation4 + $0x38]] }
  0x5c   : > { %v2074_v38 = vld [vmem:[#allocation2] sm:$0x3]  ;;  %v332_v39 = vsel %vm321_vm1, %v306_v35, %v331_v37  ;;  %s2335_s2 = sld [smem:[#allocation4 + $0x3f]] }
  0x5d   : > { %v367_v40 = vperm.slane %v2074_v38, 0  ;;  %334 = vst.msk [vmem:[#allocation3] sm:$0x3] %vm2067_vm2, %v332_v39  ;;  %v368_v41 = vperm.slane %v2074_v38, 1  ;;  %v2128_v51 = vmul.f32 %v421_v48, %v2074_v38  ;;  %s2346_s26 = sld [smem:[#allocation4 + $0x39]] }
  0x5e   : > { %s2362_s27 = sld [smem:[#allocation4 + $0x4d]] }
  0x5f   : > { %388 = vrot.lane.b32.xlu1 %v367_v40, %s1901_s21  ;;  %371 = vrot.lane.b32.xlu0 %v367_v40, %s1902_s23  ;;  %v2193_v28 = vmul.f32 %v544_v15, %v2128_v51  ;;  %s2412_s1 = sld [smem:[#allocation4 + $0x40]] }
  0x60   : > { %404 = vrot.lane.b32.xlu2 %v367_v40, %s1903_s29  ;;  %s2426_s14 = sld [smem:[#allocation4 + $0x5b]] }
  0x61   : > { %s2546_s16 = sld [smem:[#allocation4 + $0x5c]] }
  0x62   : > { %s2596_s20 = sld [smem:[#allocation4 + $0x56]] }
  0x63   : > { %s2604_s24 = sld [smem:[#allocation4 + $0x5d]] }
  0x64   : > { %v364_v42 = vld [vmem:[#allocation3] sm:$0x3] }
  0x65   : > { %v365_v43 = vmul.f32 0.25, %v364_v42 }
  0x67   : > { %390 = vrot.lane.b32.xlu1 %v368_v41, %s1901_s21  ;;  %373 = vrot.lane.b32.xlu0 %v368_v41, %s1902_s23  ;;  %v473_v44 = vperm.slane %v365_v43, 1  ;;  %v472_v45 = vperm.slane %v365_v43, 0  ;;  %v2130_v52 = vmul.f32 %v421_v48, %v365_v43  ;;  %v2234_v48 = vld [vmem:[#allocation8 + $0x5] ss:$8 sm:$0x3] }
  0x68   : > { %406 = vrot.lane.b32.xlu2 %v368_v41, %s1903_s29 }
  0x6f   : > { %425 = vrot.lane.b32.xlu1 %v368_v41, %s1904_s30  ;;  %423 = vrot.lane.b32.xlu0 %v367_v40, %s1904_s30 }
  0x70   : > { %439 = vrot.lane.b32.xlu2 %v367_v40, %s1905_s5 }
  0x77   : > { %455 = vrot.lane.b32.xlu1 %v367_v40, %s1906_s6  ;;  %441 = vrot.lane.b32.xlu0 %v368_v41, %s1905_s5  ;;  %v2222_v40 = vld [vmem:[#allocation8 + $0x4] ss:$8 sm:$0x3] }
  0x78   : > { %457 = vrot.lane.b32.xlu2 %v368_v41, %s1906_s6  ;;  %v763_v41 = vstv %s2154_s8  ;;  %s2288_s8 = sld [smem:[#allocation4 + $0x46]] }
  0x7f   : > { %478 = vrot.lane.b32.xlu1 %v473_v44, %s1902_s23  ;;  %476 = vrot.lane.b32.xlu0 %v472_v45, %s1902_s23  ;;  %s2103_s23 = sld [smem:[#allocation4 + $0xb]] }
  0x80   : > { %484 = vrot.lane.b32.xlu2 %v472_v45, %s1901_s21 }
  0x85   : > { %v964_v11 = vstv %s2103_s23  ;;  %s2380_s23 = sld [smem:[#allocation4 + $0x54]] }
  0x87   : > { %492 = vrot.lane.b32.xlu1 %v472_v45, %s1903_s29  ;;  %486 = vrot.lane.b32.xlu0 %v473_v44, %s1901_s21  ;;  %s2101_s21 = sld [smem:[#allocation4 + $0xa]] }
  0x88   : > { %494 = vrot.lane.b32.xlu2 %v473_v44, %s1903_s29  ;;  %s2105_s29 = sld [smem:[#allocation4 + $0xc]] }
  0x8d   : > { %v861_v10 = vstv %s2101_s21  ;;  %s2309_s21 = sld [smem:[#allocation4 + $0x32]] }
  0x8e   : > { %v1074_v13 = vstv %s2105_s29  ;;  %s2399_s29 = sld [smem:[#allocation4 + $0x47]] }
  0x8f   : > { %503 = vrot.lane.b32.xlu1 %v473_v44, %s1904_s30  ;;  %501 = vrot.lane.b32.xlu0 %v472_v45, %s1904_s30  ;;  %s2107_s30 = sld [smem:[#allocation4 + $0xd]] }
  0x90   : > { %509 = vrot.lane.b32.xlu2 %v472_v45, %s1905_s5 }
  0x95   : > { %v1184_v14 = vstv %s2107_s30  ;;  %s2460_s30 = sld [smem:[#allocation4 + $0x25]] }
  0x97   : > { %511 = vrot.lane.b32.xlu0 %v473_v44, %s1905_s5  ;;  %517 = vrot.lane.b32.xlu1 %v472_v45, %s1906_s6  ;;  %s2109_s5 = sld [smem:[#allocation4]] }
  0x98   : > { %519 = vrot.lane.b32.xlu2 %v473_v44, %s1906_s6  ;;  %s2114_s6 = sld [smem:[#allocation4 + $0x1]] }
  0x9d   : > { %v526_v18 = vstv %s2109_s5  ;;  %s2465_s5 = sld [smem:[#allocation4 + $0x4e]] }
  0x9e   : > { %v635_v19 = vstv %s2114_s6  ;;  %s2473_s6 = sld [smem:[#allocation4 + $0x2c]] }
  0xba   : > { %v405_v46 = vpop.permute.xlu2 %404 }
  0xc2   : > { %v407_v50 = vpop.permute.xlu2 %406 }
  0xc3   : > { %v410_v61 = vsel %vm408_vm3, %v407_v50, %v405_v46  ;;  %v409_v0 = vsel %vm408_vm3, %v405_v46, %v407_v50 }
  0xc4   : > { %v418_v8 = vmul.f32 %v3144_v53, %v410_v61  ;;  %v419_v12 = vmul.f32 %v3143_v58, %v409_v0  ;;  %v3150_v61 = vperm.slane %v2222_v40, 0 }
  0xc6   : > { %v2188_v24 = vmul.f32 %v538_v54, %v418_v8  ;;  %v2197_v29 = vmul.f32 %v538_v54, %v419_v12  ;;  %v2199_v30 = vmul.f32 %v647_v55, %v418_v8  ;;  %v2201_v31 = vmul.f32 %v647_v55, %v419_v12 }
  0xc7   : > { %v2203_v32 = vmul.f32 %v757_v56, %v418_v8  ;;  %v2207_v33 = vmul.f32 %v757_v56, %v419_v12  ;;  %v2209_v34 = vmul.f32 %v867_v59, %v418_v8  ;;  %v2211_v35 = vmul.f32 %v867_v59, %v419_v12  ;;  %v2244_v56 = vld [vmem:[#allocation8 + $0x6] ss:$8 sm:$0x3] }
  0xc8   : > { %v2216_v37 = vmul.f32 %v970_v60, %v418_v8  ;;  %v2218_v38 = vmul.f32 %v970_v60, %v419_v12  ;;  %v2220_v39 = vmul.f32 %v1080_v62, %v418_v8  ;;  %v2227_v42 = vmul.f32 %v1080_v62, %v419_v12 }
  0xc9   : > { %v2229_v43 = vmul.f32 %v1190_v63, %v418_v8  ;;  %v2231_v44 = vmul.f32 %v1190_v63, %v419_v12  ;;  %v2247_v59 = vmul.f32 %v653_v36, %v2128_v51  ;;  %v3149_v62 = vperm.slane %v2222_v40, 1 }
  0xca   : > { %v2184_v23 = vpop.permute.xlu2 %439  ;;  %3188 = vst [vmem:[#allocation26_spill] sm:$0xff] %v2216_v37  ;;  %v2254_v63 = vmul.f32 %v763_v41, %v2128_v51 }
  0xcb   : > { %3189 = vst [vmem:[#allocation27_spill] sm:$0xff] %v2227_v42 }
  0xcc   : > { %3190 = vst [vmem:[#allocation28_spill] sm:$0xff] %v2229_v43 }
  0xcd   : > { %3191 = vst [vmem:[#allocation29_spill] sm:$0xff] %v2231_v44  ;;  %v3211_v44 = vstv %s2186_s11 }
  0xd1   : > { %v389_v6 = vpop.permute.xlu1 %388  ;;  %v372_v7 = vpop.permute.xlu0 %371 }
  0xd9   : > { %v391_v45 = vpop.permute.xlu1 %390  ;;  %v374_v46 = vpop.permute.xlu0 %373 }
  0xda   : > { %v393_v50 = vsel %vm392_vm4, %v389_v6, %v391_v45  ;;  %v394_v54 = vsel %vm392_vm4, %v391_v45, %v389_v6  ;;  %v378_v55 = vsel %vm377_vm5, %v372_v7, %v374_v46  ;;  %v379_v60 = vsel %vm377_vm5, %v374_v46, %v372_v7 }
  0xdb   : > { %v402_v0 = vmul.f32 %v3146_v1, %v394_v54  ;;  %v403_v6 = vmul.f32 %v3145_v2, %v393_v50  ;;  %v3152_v7 = vperm.slane %v2234_v48, 1  ;;  %v2264_v12 = vmul.f32 %v3147_v17, %v378_v55  ;;  %v2274_v50 = vpop.permute.xlu2 %457 }
  0xdc   : > { %v2271_v45 = vmul.f32 %v3148_v16, %v379_v60 }
  0xdd   : > { %v862_v53 = vmul.f32 %v861_v10, %v402_v0  ;;  %v863_v2 = vmul.f32 %v861_v10, %v403_v6  ;;  %v534_v17 = vmul.f32 %v532_v3, %v403_v6  ;;  %v528_v16 = vmul.f32 %v526_v18, %v2264_v12 }
  0xde   : > { %v533_v10 = vmul.f32 %v532_v3, %v402_v0  ;;  %v642_v36 = vmul.f32 %v641_v4, %v402_v0  ;;  %v856_v1 = vmul.f32 %v855_v21, %v2271_v45  ;;  %v857_v55 = vmul.f32 %v855_v21, %v2264_v12 }
  0xdf   : > { %v2313_v46 = vmul.f32 %v641_v4, %v403_v6  ;;  %v2317_v54 = vmul.f32 %v751_v9, %v402_v0  ;;  %v2321_v3 = vmul.f32 %v751_v9, %v403_v6  ;;  %v2325_v26 = vmul.f32 %v964_v11, %v402_v0 }
  0xe0   : > { %v2331_v21 = vmul.f32 %v964_v11, %v403_v6  ;;  %v864_v15 = vadd.f32 %v862_v53, %v856_v1  ;;  %v865_v4 = vadd.f32 %v863_v2, %v857_v55  ;;  %v2339_v9 = vmul.f32 %v1074_v13, %v402_v0 }
  0xe1   : > { %v426_v60 = vpop.permute.xlu1 %425  ;;  %v424_v58 = vpop.permute.xlu0 %423  ;;  %v636_v8 = vmul.f32 %v635_v19, %v2271_v45  ;;  %v536_v41 = vadd.f32 %v534_v17, %v528_v16  ;;  %v2350_v53 = vmul.f32 %v1074_v13, %v403_v6  ;;  %v2354_v1 = vmul.f32 %v1184_v14, %v402_v0 }
  0xe2   : > { %v429_v25 = vsel %vm427_vm6, %v426_v60, %v424_v58  ;;  %v428_v11 = vsel %vm427_vm6, %v424_v58, %v426_v60  ;;  %v2357_v2 = vadd.f32 %v2209_v34, %v864_v15  ;;  %v2360_v55 = vadd.f32 %v2211_v35, %v865_v4 }
  0xe3   : > { %3192 = vst [vmem:[#allocation30_spill] sm:$0xff] %v2350_v53  ;;  %v2366_v58 = vmul.f32 %v1184_v14, %v403_v6  ;;  %v527_v13 = vmul.f32 %v526_v18, %v2271_v45  ;;  %v2374_v16 = vmul.f32 %v635_v19, %v2264_v12  ;;  %v2378_v17 = vmul.f32 %v3149_v62, %v429_v25  ;;  %v2396_v19 = vpop.permute.xlu2 %484 }
  0xe4   : > { %3193 = vst [vmem:[#allocation31_spill] sm:$0xff] %v2354_v1  ;;  %v2385_v34 = vmul.f32 %v745_v20, %v2271_v45  ;;  %v2390_v14 = vmul.f32 %v745_v20, %v2264_v12  ;;  %v2394_v18 = vmul.f32 %v3150_v61, %v428_v11  ;;  %v590_v35 = vstv %s2288_s8  ;;  %s2491_s8 = sld [smem:[#allocation4 + $0x3a]] }
  0xe5   : > { %3194 = vst [vmem:[#allocation32_spill] sm:$0xff] %v2357_v2  ;;  %v2404_v25 = vmul.f32 %v958_v22, %v2271_v45  ;;  %v2409_v0 = vmul.f32 %v958_v22, %v2264_v12  ;;  %v542_v15 = vadd.f32 %v2197_v29, %v536_v41  ;;  %v644_v60 = vadd.f32 %v642_v36, %v636_v8 }
  0xe6   : > { %3195 = vst [vmem:[#allocation33_spill] sm:$0xff] %v2360_v55  ;;  %v3197_v36 = vstv %s2172_s9  ;;  %v3198_v62 = vperm.slane %v2234_v48, 0 }
  0xe7   : > { %3196 = vst [vmem:[#allocation34_spill] sm:$0xff] %v2366_v58  ;;  %v556_v41 = vmul.f32 %v3197_v36, %v2378_v17  ;;  %v3201_v36 = vperm.slane %v2244_v56, 1 }
  0xe9   : > { %v456_v20 = vpop.permute.xlu1 %455  ;;  %v442_v6 = vpop.permute.xlu0 %441 }
  0xea   : > { %v444_v4 = vsel %vm443_vm7, %v2184_v23, %v442_v6  ;;  %v445_v11 = vsel %vm443_vm7, %v442_v6, %v2184_v23  ;;  %v460_v22 = vsel %vm459_vm8, %v456_v20, %v2274_v50  ;;  %v461_v29 = vsel %vm459_vm8, %v2274_v50, %v456_v20 }
  0xeb   : > { %v2430_v8 = vmul.f32 %v3152_v7, %v445_v11  ;;  %v2437_v6 = vmul.f32 %v590_v35, %v2130_v52  ;;  %v2441_v61 = vmul.f32 %v3198_v62, %v444_v4  ;;  %v3199_v20 = vstv %s2178_s10 }
  0xec   : > { %v664_v27 = vmul.f32 %v3199_v20, %v2394_v18  ;;  %v535_v11 = vadd.f32 %v533_v10, %v527_v13  ;;  %v3200_v7 = vperm.slane %v2244_v56, 0  ;;  %v2453_v35 = vmul.f32 %v3201_v36, %v461_v29 }
  0xed   : > { %v3202_v23 = vperm.slane %v2193_v28, 1  ;;  %v3203_v4 = vstv %s2186_s11  ;;  %v650_v10 = vadd.f32 %v2199_v30, %v644_v60  ;;  %v3205_v30 = vperm.slane %v2247_v59, 0  ;;  %s2526_s11 = sld [smem:[#allocation4 + $0x48]] }
  0xee   : > { %v2449_v55 = vmul.f32 %v3200_v7, %v460_v22  ;;  %v562_v50 = vmul.f32 %v3203_v4, %v2430_v8  ;;  %v3204_v7 = vstv %s2172_s9  ;;  %v3206_v4 = vstv %s2205_s12  ;;  %s2482_s9 = sld [smem:[#allocation4 + $0x33]] }
  0xef   : > { %v552_v62 = vadd.f32 %v3202_v23, %v542_v15  ;;  %v555_v22 = vmul.f32 %v3204_v7, %v2394_v18  ;;  %v660_v60 = vadd.f32 %v3205_v30, %v650_v10  ;;  %v670_v20 = vmul.f32 %v3206_v4, %v2441_v61  ;;  %v495_v10 = vpop.permute.xlu2 %494 }
  0xf0   : > { %v699_v13 = vstv %s2399_s29  ;;  %v541_v2 = vadd.f32 %v2188_v24, %v535_v11  ;;  %v3207_v36 = vstv %s2195_s3  ;;  %v3208_v23 = vstv %s2236_s17  ;;  %s2544_s29 = sld [smem:[#allocation4 + $0x41]] }
  0xf1   : > { %v558_v29 = vadd.f32 %v556_v41, %v552_v62  ;;  %v479_v41 = vpop.permute.xlu1 %478  ;;  %v477_v62 = vpop.permute.xlu0 %476  ;;  %v568_v15 = vmul.f32 %v3207_v36, %v2453_v35  ;;  %v676_v42 = vmul.f32 %v3208_v23, %v2449_v55  ;;  %v3209_v36 = vperm.slane %v2160_v5, 0 }
  0xf2   : > { %v480_v24 = vsel %vm377_vm5, %v477_v62, %v479_v41  ;;  %v481_v11 = vsel %vm377_vm5, %v479_v41, %v477_v62  ;;  %v3210_v23 = vperm.slane %v2160_v5, 1  ;;  %v2507_v53 = vmul.f32 %v699_v13, %v2130_v52 }
  0xf3   : > { %v564_v7 = vadd.f32 %v562_v50, %v558_v29  ;;  %v666_v29 = vadd.f32 %v664_v27, %v660_v60  ;;  %v2500_v30 = vmul.f32 %v481_v11, %v3209_v36  ;;  %v561_v58 = vmul.f32 %v3211_v44, %v2441_v61 }
  0xf4   : > { %v2504_v4 = vmul.f32 %v480_v24, %v3210_v23  ;;  %v3212_v41 = vperm.slane %v2193_v28, 0  ;;  %v3213_v60 = vstv %s2195_s3  ;;  %v754_v5 = vadd.f32 %v2317_v54, %v2385_v34  ;;  %s2532_s3 = sld [smem:[#allocation4 + $0x55]] }
  0xf5   : > { %v672_v43 = vadd.f32 %v670_v20, %v666_v29  ;;  %v567_v62 = vmul.f32 %v3213_v60, %v2449_v55  ;;  %v570_v24 = vadd.f32 %v568_v15, %v564_v7  ;;  %v3214_v11 = vstv %s2213_s13  ;;  %s2584_s13 = sld [smem:[#allocation4 + $0x4f]] }
  0xf6   : > { %v551_v27 = vadd.f32 %v3212_v41, %v541_v2  ;;  %v574_v13 = vmul.f32 %v3214_v11, %v2504_v4  ;;  %v3215_v36 = vstv %s2309_s21  ;;  %v3154_v20 = vstv %s2460_s30 }
  0xf7   : > { %v682_v44 = vmul.f32 %v3215_v36, %v2500_v30  ;;  %v760_v23 = vadd.f32 %v2203_v32, %v754_v5  ;;  %v678_v54 = vadd.f32 %v676_v42, %v672_v43  ;;  %v3216_v15 = vmov %v3214_v11 }
  0xf8   : > { %v557_v2 = vadd.f32 %v555_v22, %v551_v27  ;;  %v573_v7 = vmul.f32 %v3216_v15, %v2500_v30  ;;  %v3217_v41 = vstv %s2225_s0  ;;  %v576_v11 = vadd.f32 %v574_v13, %v570_v24 }
  0xf9   : > { %v774_v60 = vmul.f32 %v3217_v41, %v2394_v18  ;;  %v780_v22 = vmul.f32 %v3154_v20, %v2441_v61  ;;  %v3159_v27 = vstv %s2473_s6  ;;  %v493_v32 = vpop.permute.xlu1 %492  ;;  %v487_v42 = vpop.permute.xlu0 %486  ;;  %v684_v43 = vadd.f32 %v682_v44, %v678_v54 }
  0xfa   : > { %v563_v36 = vadd.f32 %v561_v58, %v557_v2  ;;  %v3218_v5 = vperm.slane %v2254_v63, 0  ;;  %v3158_v50 = vstv %s2482_s9  ;;  %v488_v58 = vsel %vm392_vm4, %v2396_v19, %v487_v42 }
  0xfb   : > { %v489_v13 = vsel %vm392_vm4, %v487_v42, %v2396_v19  ;;  %v496_v44 = vsel %vm408_vm3, %v493_v32, %v495_v10  ;;  %v497_v2 = vsel %vm408_vm3, %v495_v10, %v493_v32  ;;  %v3220_v41 = vperm.slane %v2138_v57, 1 }
  0xfc   : > { %v770_v15 = vadd.f32 %v3218_v5, %v760_v23  ;;  %v3219_v23 = vperm.slane %v2138_v57, 0  ;;  %v3221_v20 = vperm.slane %v2120_v49, 0  ;;  %v3222_v42 = vperm.slane %v2120_v49, 1 }
  0xfd   : > { %v2568_v5 = vmul.f32 %v488_v58, %v3220_v41  ;;  %v569_v34 = vadd.f32 %v567_v62, %v563_v36  ;;  %v786_v32 = vmul.f32 %v3159_v27, %v2449_v55  ;;  %v792_v57 = vmul.f32 %v3158_v50, %v2500_v30  ;;  %v510_v58 = vpop.permute.xlu2 %509 }
  0xfe   : > { %v2564_v54 = vmul.f32 %v489_v13, %v3219_v23  ;;  %v2572_v19 = vmul.f32 %v497_v2, %v3221_v20  ;;  %v2576_v29 = vmul.f32 %v496_v44, %v3222_v42  ;;  %v776_v10 = vadd.f32 %v774_v60, %v770_v15 }
  0xff   : > { %v3223_v20 = vstv %s2327_s22  ;;  %v3224_v49 = vstv %s2335_s2  ;;  %v3225_v62 = vstv %s2346_s26  ;;  %v809_v36 = vstv %s2526_s11  ;;  %s2713_s22 = sld [smem:[#allocation4 + $0x20]] }
 0x100   : > { %v580_v13 = vmul.f32 %v3223_v20, %v2568_v5  ;;  %v586_v44 = vmul.f32 %v3224_v49, %v2576_v29  ;;  %v688_v60 = vmul.f32 %v3225_v62, %v2564_v54  ;;  %v3226_v15 = vstv %s2412_s1  ;;  %s2817_s11 = sld [smem:[#allocation4 + $0x36]] }
 0x101   : > { %v694_v2 = vmul.f32 %v3226_v15, %v2572_v19  ;;  %v575_v23 = vadd.f32 %v573_v7, %v569_v34  ;;  %v3227_v41 = vmov %v3223_v20  ;;  %v782_v20 = vadd.f32 %v780_v22, %v776_v10  ;;  %v504_v7 = vpop.permute.xlu1 %503  ;;  %v502_v22 = vpop.permute.xlu0 %501 }
 0x102   : > { %v579_v42 = vmul.f32 %v3227_v41, %v2564_v54  ;;  %v582_v50 = vadd.f32 %v580_v13, %v576_v11  ;;  %v690_v49 = vadd.f32 %v688_v60, %v684_v43  ;;  %v3161_v27 = vstv %s2532_s3 }
 0x103   : > { %v3228_v62 = vstv %s2335_s2  ;;  %v788_v1 = vadd.f32 %v786_v32, %v782_v20  ;;  %v3229_v37 = vstv %s2491_s8  ;;  %v755_v34 = vadd.f32 %v2321_v3, %v2390_v14  ;;  %s2727_s2 = sld [smem:[#allocation4 + $0x1a]] }
 0x104   : > { %v585_v28 = vmul.f32 %v3228_v62, %v2572_v19  ;;  %v581_v24 = vadd.f32 %v579_v42, %v575_v23  ;;  %v798_v15 = vmul.f32 %v3229_v37, %v2564_v54  ;;  %v588_v10 = vadd.f32 %v586_v44, %v582_v50 }
 0x105   : > { %v3160_v43 = vstv %s2544_s29  ;;  %v2618_v13 = vmul.f32 %v809_v36, %v2130_v52  ;;  %v505_v37 = vsel %vm427_vm6, %v502_v22, %v504_v7  ;;  %v506_v3 = vsel %vm427_vm6, %v504_v7, %v502_v22 }
 0x106   : > { %v696_v14 = vadd.f32 %v694_v2, %v690_v49  ;;  %v794_v32 = vadd.f32 %v792_v57, %v788_v1  ;;  %v3230_v60 = vperm.slane %v2222_v40, 0  ;;  %v3231_v44 = vperm.slane %v2222_v40, 1 }
 0x107   : > { %v587_v36 = vadd.f32 %v585_v28, %v581_v24  ;;  %v767_v41 = vperm.slane %v2254_v63, 1  ;;  %v804_v20 = vmul.f32 %v3160_v43, %v2572_v19  ;;  %v819_v2 = vstv %s2584_s13  ;;  %s2876_s13 = sld [smem:[#allocation4 + $0x60]] }
 0x108   : > { %v2626_v50 = vmul.f32 %v505_v37, %v3230_v60  ;;  %v2630_v23 = vmul.f32 %v506_v3, %v3231_v44  ;;  %v800_v42 = vadd.f32 %v798_v15, %v794_v32  ;;  %v761_v1 = vadd.f32 %v2207_v33, %v755_v34  ;;  %v520_v3 = vpop.permute.xlu2 %519 }
 0x109   : > { %v3232_v57 = vstv %s2362_s27  ;;  %v3233_v40 = vstv %s2465_s5  ;;  %v3234_v63 = vstv %s2225_s0  ;;  %v3235_v15 = vperm.slane %v2437_v6, 1  ;;  %v512_v11 = vpop.permute.xlu0 %511  ;;  %s2699_s0 = sld [smem:[#allocation4 + $0x19]] }
 0x10a   : > { %v602_v49 = vmul.f32 %v3232_v57, %v2630_v23  ;;  %v710_v28 = vmul.f32 %v3233_v40, %v2626_v50  ;;  %v775_v62 = vmul.f32 %v3234_v63, %v2378_v17  ;;  %v3236_v22 = vperm.slane %v2507_v53, 0  ;;  %s2729_s27 = sld [smem:[#allocation4 + $0x27]] }
 0x10b   : > { %v598_v7 = vadd.f32 %v3235_v15, %v588_v10  ;;  %v812_v33 = vperm.slane %v2618_v13, 0  ;;  %v3237_v32 = vperm.slane %v2437_v6, 0  ;;  %v3238_v44 = vmov %v3232_v57  ;;  %v518_v6 = vpop.permute.xlu1 %517 }
 0x10c   : > { %v706_v37 = vadd.f32 %v3236_v22, %v696_v14  ;;  %v601_v57 = vmul.f32 %v3238_v44, %v2626_v50  ;;  %v771_v40 = vadd.f32 %v767_v41, %v761_v1  ;;  %v3239_v43 = vstv %s2460_s30  ;;  %s1908_s30 = smov 2  }
 0x10d   : > { %v597_v60 = vadd.f32 %v3237_v32, %v587_v36  ;;  %v781_v63 = vmul.f32 %v3239_v43, %v2430_v8  ;;  %v806_v24 = vadd.f32 %v804_v20, %v800_v42  ;;  %v820_v10 = vmul.f32 %v819_v2, %v2626_v50 }
 0x10e   : > { %v3240_v14 = vstv %s2473_s6  ;;  %v3241_v22 = vstv %s2482_s9  ;;  %v604_v36 = vadd.f32 %v602_v49, %v598_v7  ;;  %v712_v32 = vadd.f32 %v710_v28, %v706_v37  ;;  %s2765_s6 = sld [smem:[#allocation4 + $0x4a]] }
 0x10f   : > { %v787_v15 = vmul.f32 %v3240_v14, %v2453_v35  ;;  %v793_v34 = vmul.f32 %v3241_v22, %v2504_v4  ;;  %v777_v44 = vadd.f32 %v775_v62, %v771_v40  ;;  %v645_v43 = vadd.f32 %v2313_v46, %v2374_v16  ;;  %s2771_s9 = sld [smem:[#allocation4 + $0x43]] }
 0x110   : > { %v513_v41 = vsel %vm443_vm7, %v510_v58, %v512_v11  ;;  %v514_v42 = vsel %vm443_vm7, %v512_v11, %v510_v58  ;;  %v521_v20 = vsel %vm459_vm8, %v518_v6, %v520_v3  ;;  %v522_v1 = vsel %vm459_vm8, %v520_v3, %v518_v6 }
 0x111   : > { %v3242_v49 = vperm.slane %v2234_v48, 0  ;;  %v3243_v46 = vperm.slane %v2234_v48, 1  ;;  %v3244_v62 = vperm.slane %v2244_v56, 0  ;;  %v3245_v11 = vperm.slane %v2244_v56, 1 }
 0x112   : > { %v603_v37 = vadd.f32 %v601_v57, %v597_v60  ;;  %v783_v3 = vadd.f32 %v781_v63, %v777_v44  ;;  %v651_v40 = vadd.f32 %v2201_v31, %v645_v43  ;;  %v657_v14 = vperm.slane %v2247_v59, 1 }
 0x113   : > { %v2683_v28 = vmul.f32 %v513_v41, %v3242_v49  ;;  %v2687_v16 = vmul.f32 %v514_v42, %v3243_v46  ;;  %v2691_v58 = vmul.f32 %v521_v20, %v3244_v62  ;;  %v2695_v7 = vmul.f32 %v522_v1, %v3245_v11 }
 0x114   : > { %v3246_v48 = vstv %s2380_s23  ;;  %v3247_v6 = vstv %s2426_s14  ;;  %v3248_v42 = vstv %s2546_s16  ;;  %v3251_v44 = vstv %s2491_s8  ;;  %s2742_s23 = sld [smem:[#allocation4 + $0x21]]  ;;  %s1907_s14 = smov 3  }
 0x115   : > { %v608_v22 = vmul.f32 %v3246_v48, %v2687_v16  ;;  %v614_v41 = vmul.f32 %v3247_v6, %v2695_v7  ;;  %v716_v56 = vmul.f32 %v3161_v27, %v2683_v28  ;;  %v722_v60 = vmul.f32 %v3248_v42, %v2691_v58  ;;  %s1909_s8 = smov 1  }
 0x116   : > { %v3249_v31 = vmov %v3246_v48  ;;  %v3250_v57 = vmov %v3247_v6  ;;  %v799_v43 = vmul.f32 %v3251_v44, %v2568_v5  ;;  %v3252_v20 = vstv %s2178_s10  ;;  %s2737_s10 = sld [smem:[#allocation4 + $0x2e]] }
 0x117   : > { %v607_v59 = vmul.f32 %v3249_v31, %v2683_v28  ;;  %v613_v63 = vmul.f32 %v3250_v57, %v2691_v58  ;;  %v665_v1 = vmul.f32 %v3252_v20, %v2378_v17  ;;  %v610_v49 = vadd.f32 %v608_v22, %v604_v36 }
 0x118   : > { %v718_v46 = vadd.f32 %v716_v56, %v712_v32  ;;  %v816_v62 = vadd.f32 %v812_v33, %v806_v24  ;;  %v789_v11 = vadd.f32 %v787_v15, %v783_v3  ;;  %v3253_v6 = vstv %s2596_s20  ;;  %s2789_s20 = sld [smem:[#allocation4 + $0x58]] }
 0x119   : > { %v609_v48 = vadd.f32 %v607_v59, %v603_v37  ;;  %v826_v42 = vmul.f32 %v3253_v6, %v2683_v28  ;;  %v661_v31 = vadd.f32 %v657_v14, %v651_v40  ;;  %v3254_v57 = vstv %s2205_s12  ;;  %s2747_s12 = sld [smem:[#allocation4 + $0x35]] }
 0x11a   : > { %v671_v44 = vmul.f32 %v3254_v57, %v2430_v8  ;;  %v616_v20 = vadd.f32 %v614_v41, %v610_v49  ;;  %v724_v27 = vadd.f32 %v722_v60, %v718_v46  ;;  %v795_v36 = vadd.f32 %v793_v34, %v789_v11 }
 0x11b   : > { %v3255_v24 = vstv %s2544_s29  ;;  %v615_v15 = vadd.f32 %v613_v63, %v609_v48  ;;  %v822_v32 = vadd.f32 %v820_v10, %v816_v62  ;;  %v667_v37 = vadd.f32 %v665_v1, %v661_v31  ;;  %s2823_s29 = sld [smem:[#allocation4 + $0x4b]] }
 0x11c   : > { %v805_v33 = vmul.f32 %v3255_v24, %v2576_v29  ;;  %v3256_v3 = vstv %s2236_s17  ;;  %v3257_v14 = vstv %s2132_s19  ;;  %619 = vrot.lane.b32.xlu1 %v616_v20, %s1907_s14  ;;  %726 = vrot.lane.b32.xlu2 %v724_v27, %s1908_s30  ;;  %v801_v34 = vadd.f32 %v799_v43, %v795_v36  ;;  %s2757_s17 = sld [smem:[#allocation4 + $0x3c]] }
 0x11d   : > { %v677_v40 = vmul.f32 %v3256_v3, %v2453_v35  ;;  %v1069_v22 = vmul.f32 %v3257_v14, %v2271_v45  ;;  %v813_v10 = vperm.slane %v2618_v13, 1  ;;  %v821_v41 = vmul.f32 %v819_v2, %v2630_v23  ;;  %617 = vrot.lane.b32.xlu0 %v615_v15, %s1907_s14  ;;  %s2894_s14 = sld [smem:[#allocation4 + $0x29]] }
 0x11e   : > { %v828_v56 = vadd.f32 %v826_v42, %v822_v32  ;;  %v3258_v60 = vstv %s2604_s24  ;;  %v673_v63 = vadd.f32 %v671_v44, %v667_v37  ;;  %v3259_v1 = vstv %s2309_s21  ;;  %s2782_s21 = sld [smem:[#allocation4 + $0x51]] }
 0x11f   : > { %v832_v59 = vmul.f32 %v3258_v60, %v2691_v58  ;;  %v683_v27 = vmul.f32 %v3259_v1, %v2504_v4  ;;  %v807_v13 = vadd.f32 %v805_v33, %v801_v34  ;;  %v968_v2 = vadd.f32 %v2331_v21, %v2409_v0  ;;  %s2798_s24 = sld [smem:[#allocation4 + $0x28]] }
 0x120   : > { %v976_v43 = vstv %s2699_s0  ;;  %v986_v49 = vstv %s2713_s22  ;;  %v3260_v46 = vmov %v3253_v6  ;;  %v679_v11 = vadd.f32 %v677_v40, %v673_v63  ;;  %s2879_s0 = sld [smem:[#allocation4 + $0x1b]] }
 0x121   : > { %v827_v62 = vmul.f32 %v3260_v46, %v2687_v16  ;;  %v3261_v48 = vstv %s2346_s26  ;;  %v2780_v42 = vmul.f32 %v976_v43, %v2128_v51  ;;  %v817_v31 = vadd.f32 %v813_v10, %v807_v13  ;;  %s2802_s26 = sld [smem:[#allocation4 + $0x5f]] }
 0x122   : > { %v689_v6 = vmul.f32 %v3261_v48, %v2568_v5  ;;  %v3262_v21 = vmov %v3258_v60  ;;  %v974_v57 = vadd.f32 %v2218_v38, %v968_v2  ;;  %v992_v44 = vstv %s2729_s27  ;;  %s2936_s22 = sld [smem:[#allocation4 + $0x4c]] }
 0x123   : > { %v833_v0 = vmul.f32 %v3262_v21, %v2695_v7  ;;  %v685_v20 = vadd.f32 %v683_v27, %v679_v11  ;;  %v3263_v36 = vstv %s2412_s1  ;;  %v980_v33 = vperm.slane %v2780_v42, 1  ;;  %s2808_s1 = sld [smem:[#allocation4 + $0x2f]] }
 0x124   : > { %v695_v24 = vmul.f32 %v3263_v36, %v2576_v29  ;;  %v988_v15 = vmul.f32 %v986_v49, %v2378_v17  ;;  %v834_v32 = vadd.f32 %v832_v59, %v828_v56  ;;  %v823_v38 = vadd.f32 %v821_v41, %v817_v31  ;;  %s2945_s27 = sld [smem:[#allocation4 + $0x45]] }
 0x125   : > { %v703_v37 = vperm.slane %v2507_v53, 1  ;;  %v998_v3 = vstv %s2737_s10  ;;  %v691_v40 = vadd.f32 %v689_v6, %v685_v20  ;;  %v984_v14 = vadd.f32 %v980_v33, %v974_v57  ;;  %s1910_s10 = smov 127  }
 0x126   : > { %v994_v34 = vmul.f32 %v992_v44, %v2430_v8  ;;  %v1004_v10 = vstv %s2747_s12  ;;  %836 = vrot.lane.b32.xlu1 %v834_v32, %s1909_s8  ;;  %v829_v41 = vadd.f32 %v827_v62, %v823_v38  ;;  %v3264_v53 = vstv %s2465_s5  ;;  %s2832_s5 = sld [smem:[#allocation4 + $0x3d]] }
 0x127   : > { %v711_v56 = vmul.f32 %v3264_v53, %v2630_v23  ;;  %v3265_v60 = vstv %s2532_s3  ;;  %v1010_v63 = vstv %s2757_s17  ;;  %v697_v1 = vadd.f32 %v695_v24, %v691_v40  ;;  %s2862_s3 = sld [smem:[#allocation4 + $0x52]] }
 0x128   : > { %v717_v59 = vmul.f32 %v3265_v60, %v2687_v16  ;;  %v990_v27 = vadd.f32 %v988_v15, %v984_v14  ;;  %v1000_v13 = vmul.f32 %v998_v3, %v2453_v35  ;;  %v1022_v2 = vstv %s2765_s6  ;;  %s2925_s6 = sld [smem:[#allocation4 + $0x37]] }
 0x129   : > { %v835_v43 = vadd.f32 %v833_v0, %v829_v41  ;;  %v3266_v46 = vstv %s2546_s16  ;;  %v1006_v11 = vmul.f32 %v1004_v10, %v2504_v4  ;;  %v1077_v48 = vadd.f32 %v2339_v9, %v1069_v22  ;;  %s2838_s16 = sld [smem:[#allocation4 + $0x44]] }
 0x12a   : > { %v723_v62 = vmul.f32 %v3266_v46, %v2695_v7  ;;  %v707_v6 = vadd.f32 %v703_v37, %v697_v1  ;;  %v996_v31 = vadd.f32 %v994_v34, %v990_v27  ;;  %v1012_v21 = vmul.f32 %v1010_v63, %v2568_v5  ;;  %s2972_s12 = sld [smem:[#allocation4 + $0x5a]] }
 0x12b   : > { %v1016_v0 = vstv %s2771_s9  ;;  %838 = vrot.lane.b32.xlu2 %v835_v43, %s1909_s8  ;;  %v2841_v57 = vmul.f32 %v1022_v2, %v2130_v52  ;;  %v1083_v9 = vadd.f32 %v2220_v39, %v1077_v48  ;;  %v1086_v22 = vstv %s2727_s2  ;;  %s2887_s2 = sld [smem:[#allocation4 + $0x22]]  ;;  %s1911_s9 = smov 126  }
 0x12c   : > { %v1096_v20 = vstv %s2742_s23  ;;  %v713_v36 = vadd.f32 %v711_v56, %v707_v6  ;;  %v1002_v24 = vadd.f32 %v1000_v13, %v996_v31  ;;  %v2847_v33 = vmul.f32 %v1086_v22, %v2128_v51  ;;  %s2932_s8 = sld [smem:[#allocation4 + $0x3e]]  ;;  %s1912_s23 = smov 125  }
 0x12d   : > { %v1102_v15 = vstv %s2798_s24  ;;  %v3267_v32 = vstv %s2132_s19  ;;  %v3268_v37 = vstv %s2140_s7  ;;  %v1018_v39 = vmul.f32 %v1016_v0, %v2576_v29  ;;  %s2868_s19 = sld [smem:[#allocation4 + $0x59]] }
 0x12e   : > { %v2853_v38 = vmul.f32 %v3267_v32, %v2264_v12  ;;  %v1179_v40 = vmul.f32 %v3268_v37, %v2271_v45  ;;  %v1032_v14 = vstv %s2782_s21  ;;  %v719_v34 = vadd.f32 %v717_v59, %v713_v36  ;;  %s2986_s17 = sld [smem:[#allocation4 + $0x61]] }
 0x12f   : > { %v1008_v41 = vadd.f32 %v1006_v11, %v1002_v24  ;;  %v1089_v53 = vperm.slane %v2847_v33, 0  ;;  %v1097_v56 = vmul.f32 %v1096_v20, %v2394_v18  ;;  %v1026_v45 = vperm.slane %v2841_v57, 1  ;;  %s1524_s21 = sld [smem:[#allocation4 + $0x18]] }
 0x130   : > { %v1038_v60 = vstv %s2789_s20  ;;  %v1103_v1 = vmul.f32 %v1102_v15, %v2441_v61  ;;  %v1108_v27 = vstv %s2808_s1  ;;  %v725_v59 = vadd.f32 %v723_v62, %v719_v34  ;;  %s1525_s20 = sld [smem:[#allocation4 + $0x1f]] }
 0x131   : > { %v1014_v13 = vadd.f32 %v1012_v21, %v1008_v41  ;;  %v1093_v2 = vadd.f32 %v1089_v53, %v1083_v9  ;;  %v1132_v43 = vstv %s2823_s29  ;;  %v1034_v46 = vmul.f32 %v1032_v14, %v2630_v23  ;;  %s1526_s24 = sld [smem:[#allocation4 + $0x26]] }
 0x132   : > { %v1044_v11 = vstv %s2802_s26  ;;  %v1114_v48 = vstv %s2817_s11  ;;  %v1120_v6 = vstv %s2832_s5  ;;  %728 = vrot.lane.b32.xlu0 %v725_v59, %s1908_s30  ;;  %v1109_v21 = vmul.f32 %v1108_v27, %v2449_v55  ;;  %s2911_s30 = sld [smem:[#allocation4 + $0x30]] }
 0x133   : > { %v1020_v62 = vadd.f32 %v1018_v39, %v1014_v13  ;;  %v1099_v31 = vadd.f32 %v1097_v56, %v1093_v2  ;;  %v3162_v9 = vstv %s2838_s16  ;;  %v1040_v22 = vmul.f32 %v1038_v60, %v2687_v16  ;;  %s1527_s26 = sld [smem:[#allocation4 + $0x2d]] }
 0x134   : > { %v2900_v36 = vmul.f32 %v1132_v43, %v2130_v52  ;;  %v967_v24 = vadd.f32 %v2325_v26, %v2404_v25  ;;  %v979_v32 = vperm.slane %v2780_v42, 0  ;;  %v1046_v39 = vmul.f32 %v1044_v11, %v2695_v7  ;;  %v3269_v25 = vld [vmem:[#allocation26_spill] sm:$0xff]  ;;  %s1528_s1 = sld [smem:[#allocation4 + $0x34]] }
 0x135   : > { %v1030_v37 = vadd.f32 %v1026_v45, %v1020_v62  ;;  %v1105_v34 = vadd.f32 %v1103_v1, %v1099_v31  ;;  %v1115_v41 = vmul.f32 %v1114_v48, %v2500_v30  ;;  %v1121_v53 = vmul.f32 %v1120_v6, %v2564_v54  ;;  %s1529_s11 = sld [smem:[#allocation4 + $0x3b]] }
 0x136   : > { %v1127_v26 = vmul.f32 %v3162_v9, %v2572_v19  ;;  %v973_v42 = vadd.f32 %v3269_v25, %v967_v24  ;;  %v987_v56 = vmul.f32 %v986_v49, %v2394_v18  ;;  %v1142_v59 = vstv %s2862_s3  ;;  %v3270_v24 = vld [vmem:[#allocation31_spill] sm:$0xff]  ;;  %s1530_s29 = sld [smem:[#allocation4 + $0x42]] }
 0x137   : > { %v1036_v45 = vadd.f32 %v1034_v46, %v1030_v37  ;;  %v1111_v1 = vadd.f32 %v1109_v21, %v1105_v34  ;;  %v3164_v13 = vstv %s2868_s19  ;;  %v1135_v2 = vperm.slane %v2900_v36, 0  ;;  %s1531_s5 = sld [smem:[#allocation4 + $0x49]] }
 0x138   : > { %v3163_v43 = vstv %s2876_s13  ;;  %v983_v62 = vadd.f32 %v979_v32, %v973_v42  ;;  %v993_v31 = vmul.f32 %v992_v44, %v2441_v61  ;;  %v1187_v21 = vadd.f32 %v3270_v24, %v1179_v40  ;;  %s3061_s3 = sld [smem:[#allocation4 + $0x57]] }
 0x139   : > { %v1042_v49 = vadd.f32 %v1040_v22, %v1036_v45  ;;  %v1117_v46 = vadd.f32 %v1115_v41, %v1111_v1  ;;  %v1196_v37 = vstv %s2879_s0  ;;  %v999_v25 = vmul.f32 %v998_v3, %v2449_v55  ;;  %v3271_v22 = vld [vmem:[#allocation28_spill] sm:$0xff]  ;;  %s1580_s0 = sshll.u32 %s1888_s18, 1 }
 0x13a   : > { %v989_v34 = vadd.f32 %v987_v56, %v983_v62  ;;  %v1197_v32 = vmul.f32 %v1196_v37, %v2128_v51  ;;  %v1206_v44 = vstv %s2887_s2  ;;  %v1193_v41 = vadd.f32 %v3271_v22, %v1187_v21 }
 0x13b   : > { %v1048_v42 = vadd.f32 %v1046_v39, %v1042_v49  ;;  %v1123_v9 = vadd.f32 %v1121_v53, %v1117_v46  ;;  %v1212_v45 = vstv %s2894_s14  ;;  %v1005_v56 = vmul.f32 %v1004_v10, %v2500_v30 }
 0x13c   : > { %v995_v40 = vadd.f32 %v993_v31, %v989_v34  ;;  %v1199_v3 = vperm.slane %v1197_v32, 0  ;;  %v1207_v1 = vmul.f32 %v1206_v44, %v2394_v18  ;;  %v3272_v62 = vstv %s2140_s7  ;;  %s2963_s7 = sld [smem:[#allocation4 + $0x53]] }
 0x13d   : > { %v1180_v39 = vmul.f32 %v3272_v62, %v2264_v12  ;;  %1051 = vrot.lane.b32.xlu1 %v1048_v42, %s1910_s10  ;;  %v1129_v53 = vadd.f32 %v1127_v26, %v1123_v9  ;;  %v1143_v31 = vmul.f32 %v1142_v59, %v2626_v50  ;;  %v1218_v49 = vstv %s2911_s30  ;;  %s1347_s30 = scalar_lea.hbm %s3139_s4, %s1580_s0 }
 0x13e   : > { %v1001_v46 = vadd.f32 %v999_v25, %v995_v40  ;;  %v1011_v10 = vmul.f32 %v1010_v63, %v2564_v54  ;;  %v1203_v24 = vadd.f32 %v1199_v3, %v1193_v41  ;;  %v1213_v21 = vmul.f32 %v1212_v45, %v2441_v61 }
 0x13f   : > { %v1139_v12 = vadd.f32 %v1135_v2, %v1129_v53  ;;  %v1149_v9 = vmul.f32 %v3164_v13, %v2683_v28  ;;  %v1155_v26 = vmul.f32 %v3163_v43, %v2691_v58  ;;  %v1224_v37 = vstv %s2925_s6 }
 0x140   : > { %v1007_v34 = vadd.f32 %v1005_v56, %v1001_v46  ;;  %v1017_v63 = vmul.f32 %v1016_v0, %v2572_v19  ;;  %v1209_v25 = vadd.f32 %v1207_v1, %v1203_v24  ;;  %v1219_v42 = vmul.f32 %v1218_v49, %v2449_v55  ;;  %v3273_v0 = vld [vmem:[#allocation34_spill] sm:$0xff] }
 0x141   : > { %v1145_v22 = vadd.f32 %v1143_v31, %v1139_v12  ;;  %v1025_v2 = vperm.slane %v2841_v57, 0  ;;  %v1230_v41 = vstv %s2932_s8  ;;  %v1242_v40 = vstv %s2936_s22  ;;  %s1351_s8 = sshll.u32 %s1347_s30, 4  ;;  %s1337_s22 = scalar_lea.sflag [#allocation6], %s2055_s28  ;;  %s1352_s8 = int_to_ptr.hbm [resolvable:$true] %s1351_s8 }
 0x142   : > { %v1013_v3 = vadd.f32 %v1011_v10, %v1007_v34  ;;  %v1033_v62 = vmul.f32 %v1032_v14, %v2626_v50  ;;  %v1215_v53 = vadd.f32 %v1213_v21, %v1209_v25  ;;  %v1225_v43 = vmul.f32 %v1224_v37, %v2500_v30 }
 0x143   : > { %v1151_v56 = vadd.f32 %v1149_v9, %v1145_v22  ;;  %v1236_v46 = vstv %s2945_s27  ;;  %v1188_v1 = vadd.f32 %v3273_v0, %v1180_v39  ;;  %v1200_v31 = vperm.slane %v1197_v32, 1  ;;  %v3274_v9 = vld [vmem:[#allocation29_spill] sm:$0xff]  ;;  %s1816_s27 = sshra.s32 %s1352_s8, 4  ;;  %s1817_s27 = int_to_ptr.hbm [resolvable:$true] %s1816_s27 }
 0x144   : > { %v1019_v57 = vadd.f32 %v1017_v63, %v1013_v3  ;;  %v1221_v24 = vadd.f32 %v1219_v42, %v1215_v53  ;;  %v1231_v10 = vmul.f32 %v1230_v41, %v2564_v54  ;;  %v1243_v12 = vmul.f32 %v1242_v40, %v2130_v52  ;;  %p1823_p11 = scmp.lt.s32.totalorder %s1817_s27, %s3139_s4 }
 0x145   : > { %v1157_v14 = vadd.f32 %v1155_v26, %v1151_v56  ;;  %v1039_v21 = vmul.f32 %v1038_v60, %v2683_v28  ;;  %v1194_v34 = vadd.f32 %v3274_v9, %v1188_v1  ;;  %v1208_v25 = vmul.f32 %v1206_v44, %v2378_v17 }
 0x146   : > { %v1029_v22 = vadd.f32 %v1025_v2, %v1019_v57  ;;  %v1227_v13 = vadd.f32 %v1225_v43, %v1221_v24  ;;  %v1237_v39 = vmul.f32 %v1236_v46, %v2572_v19  ;;  %v1252_v32 = vstv %s2963_s7  ;;  %v3275_v43 = vld [vmem:[#allocation30_spill] sm:$0xff]  ;;  %v3276_v24 = vld [vmem:[#allocation27_spill] sm:$0xff] }
 0x147   : > { %1159 = vrot.lane.b32.xlu2 %v1157_v14, %s1911_s9  ;;  %v1045_v63 = vmul.f32 %v1044_v11, %v2691_v58  ;;  %v1258_v26 = vstv %s2972_s12  ;;  %v1204_v42 = vadd.f32 %v1200_v31, %v1194_v34  ;;  %v1214_v60 = vmul.f32 %v1212_v45, %v2430_v8 }
 0x148   : > { %v1035_v40 = vadd.f32 %v1033_v62, %v1029_v22  ;;  %v1233_v3 = vadd.f32 %v1231_v10, %v1227_v13  ;;  %v1245_v44 = vperm.slane %v1243_v12, 0  ;;  %v1078_v2 = vadd.f32 %v3275_v43, %v2853_v38 }
 0x149   : > { %v1253_v53 = vmul.f32 %v1252_v32, %v2626_v50  ;;  %v1210_v56 = vadd.f32 %v1208_v25, %v1204_v42  ;;  %v1220_v0 = vmul.f32 %v1218_v49, %v2453_v35  ;;  %v1090_v1 = vperm.slane %v2847_v33, 1 }
 0x14a   : > { %v1041_v11 = vadd.f32 %v1039_v21, %v1035_v40  ;;  %v1239_v57 = vadd.f32 %v1237_v39, %v1233_v3  ;;  %v1084_v31 = vadd.f32 %v3276_v24, %v1078_v2  ;;  %v1098_v13 = vmul.f32 %v1096_v20, %v2378_v17 }
 0x14b   : > { %v1259_v45 = vmul.f32 %v1258_v26, %v2683_v28  ;;  %v1264_v62 = vstv %s2986_s17  ;;  %v1216_v38 = vadd.f32 %v1214_v60, %v1210_v56  ;;  %v1226_v10 = vmul.f32 %v1224_v37, %v2504_v4  ;;  %s1822_s17 = scalar_lea.hbm %s3139_s4, 4 }
 0x14c   : > { %v1047_v14 = vadd.f32 %v1045_v63, %v1041_v11  ;;  %v1249_v9 = vadd.f32 %v1245_v44, %v1239_v57  ;;  %v1094_v49 = vadd.f32 %v1090_v1, %v1084_v31  ;;  %v1104_v33 = vmul.f32 %v1102_v15, %v2430_v8 }
 0x14d   : > { %v1222_v21 = vadd.f32 %v1220_v0, %v1216_v38  ;;  %v1232_v34 = vmul.f32 %v1230_v41, %v2568_v5  ;;  %v1265_v25 = vmul.f32 %v1264_v62, %v2691_v58  ;;  %v1110_v37 = vmul.f32 %v1108_v27, %v2453_v35 }
 0x14e   : > { %1049 = vrot.lane.b32.xlu0 %v1047_v14, %s1910_s10  ;;  %v1255_v20 = vadd.f32 %v1253_v53, %v1249_v9  ;;  %v1100_v22 = vadd.f32 %v1098_v13, %v1094_v49  ;;  %v1238_v63 = vmul.f32 %v1236_v46, %v2576_v29  ;;  %v1116_v15 = vmul.f32 %v1114_v48, %v2504_v4  ;;  %s1818_s10 = scalar_lea.hbm %s1817_s27, 2 }
 0x14f   : > { %v1228_v39 = vadd.f32 %v1226_v10, %v1222_v21  ;;  %v1246_v41 = vperm.slane %v1243_v12, 1  ;;  %v1122_v43 = vmul.f32 %v1120_v6, %v2568_v5  ;;  %v1254_v27 = vmul.f32 %v1252_v32, %v2630_v23  ;;  %p1819_p1 = scmp.ne.s32.totalorder %s1817_s27, %s1818_s10  ;;  %p1824_p12 = scmp.lt.s32.totalorder %s1822_s17, %s1818_s10 }
 0x150   : > { %v1261_v42 = vadd.f32 %v1259_v45, %v1255_v20  ;;  %v1106_v60 = vadd.f32 %v1104_v33, %v1100_v22  ;;  %v3277_v53 = vstv %s2838_s16  ;;  %v1260_v12 = vmul.f32 %v1258_v26, %v2687_v16  ;;  %s1532_s16 = sld [smem:[#allocation4 + $0x50]] }
 0x151   : > { %v1234_v40 = vadd.f32 %v1232_v34, %v1228_v39  ;;  %v1128_v56 = vmul.f32 %v3277_v53, %v2576_v29  ;;  %v1136_v1 = vperm.slane %v2900_v36, 1  ;;  %v1266_v6 = vmul.f32 %v1264_v62, %v2695_v7  ;;  %v3280_v39 = vld [vmem:[#allocation32_spill] sm:$0xff]  ;;  %p1820_p4 = pnand %p1819_p1, %p2013_p3  ;;  %p1825_p13 = por %p1824_p12, %p1823_p11 }
 0x152   : > { %v1267_v3 = vadd.f32 %v1265_v25, %v1261_v42  ;;  %v1112_v44 = vadd.f32 %v1110_v37, %v1106_v60  ;;  %v1144_v32 = vmul.f32 %v1142_v59, %v2630_v23  ;;  %v3278_v13 = vstv %s2868_s19  ;;  %v3281_v42 = vld [vmem:[#allocation33_spill] sm:$0xff]  ;;  %s3067_s19 = sld [smem:[#allocation4 + $0x5e]] }
 0x153   : > { %v1240_v2 = vadd.f32 %v1238_v63, %v1234_v40  ;;  %v1150_v45 = vmul.f32 %v3278_v13, %v2687_v16  ;;  %v3279_v14 = vstv %s2876_s13  ;;  %v873_v62 = vstv %s1524_s21  ;;  %s1479_s13 = sshll.u32 %s2055_s28, 1  ;;  %p1821_p8 = pneg %p1820_p4 }
 0x154   : > { %1269 = vrot.lane.b32.xlu1 %v1267_v3, %s1912_s23  ;;  %v1118_v46 = vadd.f32 %v1116_v15, %v1112_v44  ;;  %v1156_v26 = vmul.f32 %v3279_v14, %v2695_v7  ;;  %v874_v59 = vmul.f32 %v873_v62, %v2128_v51  ;;  %v883_v49 = vstv %s1525_s20  ;;  %s272_s18 = scalar_lea.vmem [#allocation12], %s1479_s13 }
 0x155   : > { %v1250_v48 = vadd.f32 %v1246_v41, %v1240_v2  ;;  %v889_v33 = vstv %s1526_s24  ;;  %v884_v20 = vmul.f32 %v883_v49, %v2394_v18  ;;  %v885_v25 = vmul.f32 %v883_v49, %v2378_v17  ;;  %s1349_s6 = sshll.u32 %s272_s18, 4  ;;  %p1826_p0 = pnand %p1825_p13, %p1821_p8  ;;  %s1350_s6 = int_to_ptr.vmem [resolvable:$true] %s1349_s6 }
 0x156   : > { %v1124_v0 = vadd.f32 %v1122_v43, %v1118_v46  ;;  %v876_v21 = vperm.slane %v874_v59, 0  ;;  %v877_v34 = vperm.slane %v874_v59, 1  ;;  %v890_v22 = vmul.f32 %v889_v33, %v2441_v61 }
 0x157   : > { %v1256_v11 = vadd.f32 %v1254_v27, %v1250_v48  ;;  %v891_v37 = vmul.f32 %v889_v33, %v2430_v8  ;;  %v895_v51 = vstv %s1527_s26  ;;  %v901_v44 = vstv %s1528_s1 }
 0x158   : > { %v1130_v57 = vadd.f32 %v1128_v56, %v1124_v0  ;;  %v880_v63 = vadd.f32 %v876_v21, %v3280_v39  ;;  %v881_v60 = vadd.f32 %v877_v34, %v3281_v42  ;;  %v896_v3 = vmul.f32 %v895_v51, %v2449_v55 }
 0x159   : > { %v1262_v24 = vadd.f32 %v1260_v12, %v1256_v11  ;;  %v897_v17 = vmul.f32 %v895_v51, %v2453_v35  ;;  %v907_v61 = vstv %s1529_s11  ;;  %v902_v27 = vmul.f32 %v901_v44, %v2500_v30 }
 0x15a   : > { %v1140_v31 = vadd.f32 %v1136_v1, %v1130_v57  ;;  %v886_v15 = vadd.f32 %v884_v20, %v880_v63  ;;  %v887_v40 = vadd.f32 %v885_v25, %v881_v60  ;;  %v903_v46 = vmul.f32 %v901_v44, %v2504_v4 }
 0x15b   : > { %v1268_v38 = vadd.f32 %v1266_v6, %v1262_v24  ;;  %v908_v53 = vmul.f32 %v907_v61, %v2564_v54  ;;  %v909_v55 = vmul.f32 %v907_v61, %v2568_v5  ;;  %v913_v12 = vstv %s1530_s29  ;;  %v734_v5 = vld [vmem:[#allocation9 + $0x1] ss:$8 sm:$0x3] }
 0x15c   : > { %v1146_v10 = vadd.f32 %v1144_v32, %v1140_v31  ;;  %v892_v18 = vadd.f32 %v890_v22, %v886_v15  ;;  %v893_v43 = vadd.f32 %v891_v37, %v887_v40  ;;  %v919_v0 = vstv %s1531_s5 }
 0x15d   : > { %1271 = vrot.lane.b32.xlu2 %v1268_v38, %s1912_s23  ;;  %v914_v11 = vmul.f32 %v913_v12, %v2572_v19  ;;  %v915_v4 = vmul.f32 %v913_v12, %v2576_v29  ;;  %v920_v57 = vmul.f32 %v919_v0, %v2130_v52  ;;  %v929_v31 = vstv %s1532_s16  ;;  %v624_v19 = vld [vmem:[#allocation9] ss:$8 sm:$0x3] }
 0x15e   : > { %v1152_v9 = vadd.f32 %v1150_v45, %v1146_v10  ;;  %v898_v56 = vadd.f32 %v896_v3, %v892_v18  ;;  %v899_v48 = vadd.f32 %v897_v17, %v893_v43  ;;  %v935_v13 = vstv %s3061_s3 }
 0x15f   : > { %v922_v10 = vperm.slane %v920_v57, 0  ;;  %v923_v14 = vperm.slane %v920_v57, 1  ;;  %v930_v29 = vmul.f32 %v929_v31, %v2626_v50  ;;  %v931_v52 = vmul.f32 %v929_v31, %v2630_v23  ;;  %v844_v50 = vld [vmem:[#allocation9 + $0x2] ss:$8 sm:$0x3] }
 0x160   : > { %v1158_v36 = vadd.f32 %v1156_v26, %v1152_v9  ;;  %v904_v35 = vadd.f32 %v902_v27, %v898_v56  ;;  %v905_v1 = vadd.f32 %v903_v46, %v899_v48  ;;  %v936_v26 = vmul.f32 %v935_v13, %v2683_v28 }
 0x161   : > { %v736_v9 = vperm.slane %v734_v5, 0  ;;  %v937_v62 = vmul.f32 %v935_v13, %v2687_v16  ;;  %v626_v34 = vperm.slane %v624_v19, 0  ;;  %v627_v20 = vperm.slane %v624_v19, 1 }
 0x162   : > { %1161 = vrot.lane.b32.xlu0 %v1158_v36, %s1911_s9  ;;  %v910_v6 = vadd.f32 %v908_v53, %v904_v35  ;;  %v911_v30 = vadd.f32 %v909_v55, %v905_v1  ;;  %v737_v36 = vperm.slane %v734_v5, 1  ;;  %v941_v25 = vstv %s3067_s19 }
 0x163   : > { %v942_v16 = vmul.f32 %v941_v25, %v2691_v58  ;;  %v943_v15 = vmul.f32 %v941_v25, %v2695_v7  ;;  %v846_v18 = vperm.slane %v844_v50, 0  ;;  %v847_v43 = vperm.slane %v844_v50, 1 }
 0x164   : > { %v916_v45 = vadd.f32 %v914_v11, %v910_v6  ;;  %v917_v38 = vadd.f32 %v915_v4, %v911_v30  ;;  %v1167_v11 = vld [vmem:[#allocation9 + $0x5] ss:$8 sm:$0x3] }
 0x165   : > { %v1169_v13 = vperm.slane %v1167_v11, 0  ;;  %v1170_v5 = vperm.slane %v1167_v11, 1 }
 0x166   : > { %v926_v33 = vadd.f32 %v922_v10, %v916_v45  ;;  %v927_v21 = vadd.f32 %v923_v14, %v917_v38 }
 0x168   : > { %v932_v39 = vadd.f32 %v930_v29, %v926_v33  ;;  %v933_v23 = vadd.f32 %v931_v52, %v927_v21 }
 0x16a   : > { %v938_v60 = vadd.f32 %v936_v26, %v932_v39  ;;  %v939_v51 = vadd.f32 %v937_v62, %v933_v23 }
 0x16c   : > { %v944_v58 = vadd.f32 %v942_v16, %v938_v60  ;;  %v945_v7 = vadd.f32 %v943_v15, %v939_v51 }
 0x176   : > { %v727_v2 = vpop.permute.xlu2 %726 }
 0x185   : > { %v839_v32 = vpop.permute.xlu2 %838 }
 0x18e   : > { %v620_v41 = vpop.permute.xlu1 %619 }
 0x18f   : > { %v618_v8 = vpop.permute.xlu0 %617 }
 0x190   : > { %v622_v22 = vsel %vm621_vm10, %v618_v8, %v620_v41  ;;  %v623_v37 = vsel %vm621_vm10, %v620_v41, %v618_v8  ;;  %v947_v41 = vld [vmem:[#allocation9 + $0x3] ss:$8 sm:$0x3]  ;;  %v1057_v8 = vld [vmem:[#allocation9 + $0x4] ss:$8 sm:$0x3] }
 0x191   : > { %v630_v3 = vmul.f32 %v626_v34, %v623_v37  ;;  %v631_v44 = vmul.f32 %v627_v20, %v622_v22  ;;  %v949_v53 = vperm.slane %v947_v41, 0  ;;  %v950_v56 = vperm.slane %v947_v41, 1 }
 0x192   : > { %v1059_v12 = vperm.slane %v1057_v8, 0  ;;  %v1060_v0 = vperm.slane %v1057_v8, 1 }
 0x193   : > { %v953_v4 = vmul.f32 %v949_v53, %v944_v58  ;;  %v954_v57 = vmul.f32 %v950_v56, %v945_v7 }
 0x198   : > { %v837_v54 = vpop.permute.xlu1 %836 }
 0x199   : > { %v841_v61 = vsel %vm840_vm11, %v837_v54, %v839_v32 }
 0x19a   : > { %v851_v55 = vmul.f32 %v847_v43, %v841_v61 }
 0x1a1   : > { %v1160_v40 = vpop.permute.xlu2 %1159 }
 0x1a4   : > { %v729_v24 = vpop.permute.xlu0 %728 }
 0x1a5   : > { %v731_v59 = vsel %vm730_vm9, %v727_v2, %v729_v24  ;;  %v732_v49 = vsel %vm730_vm9, %v729_v24, %v727_v2  ;;  %v842_v2 = vsel %vm840_vm11, %v839_v32, %v837_v54  ;;  %v1277_v54 = vld [vmem:[#allocation9 + $0x6] ss:$8 sm:$0x3] }
 0x1a6   : > { %v740_v28 = vmul.f32 %v736_v9, %v732_v49  ;;  %v741_v63 = vmul.f32 %v737_v36, %v731_v59  ;;  %v850_v48 = vmul.f32 %v846_v18, %v842_v2  ;;  %v1279_v14 = vperm.slane %v1277_v54, 0 }
 0x1a7   : > { %v1280_v19 = vperm.slane %v1277_v54, 1 }
 0x1a8   : > { %v742_v27 = vadd.f32 %v740_v28, %v630_v3  ;;  %v743_v46 = vadd.f32 %v741_v63, %v631_v44 }
 0x1aa   : > { %v852_v6 = vadd.f32 %v850_v48, %v742_v27  ;;  %v853_v30 = vadd.f32 %v851_v55, %v743_v46 }
 0x1ac   : > { %v955_v38 = vadd.f32 %v953_v4, %v852_v6  ;;  %v956_v10 = vadd.f32 %v954_v57, %v853_v30 }
 0x1af   : > { %v1052_v42 = vpop.permute.xlu1 %1051 }
 0x1b7   : > { %v1272_v45 = vpop.permute.xlu2 %1271 }
 0x1c0   : > { %v1050_v17 = vpop.permute.xlu0 %1049 }
 0x1c1   : > { %v1054_v35 = vsel %vm1053_vm12, %v1050_v17, %v1052_v42  ;;  %v1055_v1 = vsel %vm1053_vm12, %v1052_v42, %v1050_v17 }
 0x1c2   : > { %v1063_v32 = vmul.f32 %v1059_v12, %v1054_v35  ;;  %v1064_v24 = vmul.f32 %v1060_v0, %v1055_v1 }
 0x1c4   : > { %v1065_v62 = vadd.f32 %v1063_v32, %v955_v38  ;;  %v1066_v59 = vadd.f32 %v1064_v24, %v956_v10 }
 0x1c6   : > { %v1270_v31 = vpop.permute.xlu1 %1269 }
 0x1c7   : > { %v1274_v52 = vsel %vm1273_vm13, %v1270_v31, %v1272_v45  ;;  %v1275_v26 = vsel %vm1273_vm13, %v1272_v45, %v1270_v31 }
 0x1c8   : > { %v1283_v47 = vmul.f32 %v1279_v14, %v1274_v52  ;;  %v1284_v21 = vmul.f32 %v1280_v19, %v1275_v26 }
 0x1d4   : > { %v1162_v29 = vpop.permute.xlu0 %1161 }
 0x1d5   : > { %v1164_v9 = vsel %vm1163_vm14, %v1160_v40, %v1162_v29  ;;  %v1165_v36 = vsel %vm1163_vm14, %v1162_v29, %v1160_v40 }
 0x1d6   : > { %v1173_v49 = vmul.f32 %v1169_v13, %v1164_v9  ;;  %v1174_v33 = vmul.f32 %v1170_v5, %v1165_v36 }
 0x1d8   : > { %v1175_v34 = vadd.f32 %v1173_v49, %v1065_v62  ;;  %v1176_v20 = vadd.f32 %v1174_v33, %v1066_v59 }
 0x1da   : > { %v1285_v25 = vadd.f32 %v1283_v47, %v1175_v34  ;;  %v1286_v22 = vadd.f32 %v1284_v21, %v1176_v20 }
 0x1dc   : > { %v1577_v37 = vmul.f32 -1.442695, %v1285_v25  ;;  %v1578_v50 = vmul.f32 -1.442695, %v1286_v22 }
 0x1de   : > { %1689 = vpow2.f32 %v1577_v37 }
 0x1df   : > { %1691 = vpow2.f32 %v1578_v50 }
 0x1e4   : > { %v1690_v39 = vpop.eup %1689 }
 0x1e5   : > { %v1692_v23 = vpop.eup %1691  ;;  %v1293_v28 = vadd.f32 1.0, %v1690_v39 }
 0x1e6   : > { %v1294_v63 = vadd.f32 1.0, %v1692_v23 }
 0x1e7   : > { %1693 = vrcp.f32 %v1293_v28  ;;  %vm1300_vm3 = vweird.f32 %v1293_v28  ;;  %v1306_v17 = vand.u32 2147483648, %v1293_v28  ;;  %v1304_v2 = vand.u32 2147483647, %v1293_v28 }
 0x1e8   : > { %1695 = vrcp.f32 %v1294_v63  ;;  %v1321_v44 = vand.u32 2147483648, %v1294_v63  ;;  %v1319_v43 = vand.u32 2147483647, %v1294_v63  ;;  %vm1315_vm5 = vweird.f32 %v1294_v63 }
 0x1e9   : > { %v1307_v7 = vor.u32 1.1754944e-38, %v1306_v17  ;;  %vm1305_vm8 = vcmp.eq.f32.partialorder %v1304_v2, 8.507059e+37 }
 0x1ea   : > { %v1322_v27 = vor.u32 1.1754944e-38, %v1321_v44  ;;  %vm1320_vm7 = vcmp.eq.f32.partialorder %v1319_v43, 8.507059e+37 }
 0x1ed   : > { %v1694_v42 = vpop.eup %1693 }
 0x1ee   : > { %v1696_v60 = vpop.eup %1695  ;;  %v1296_v51 = vmul.f32 %v1694_v42, %v1293_v28  ;;  %vm1301_vm15 = vweird.f32 %v1694_v42 }
 0x1ef   : > { %v1311_v16 = vmul.f32 %v1696_v60, %v1294_v63  ;;  %vm1316_vm0 = vweird.f32 %v1696_v60  ;;  %vm3092_vm4 = vmor %vm1300_vm3, %vm1301_vm15 }
 0x1f0   : > { %v1297_v15 = vsub.f32 1.0, %v1296_v51  ;;  %vm1317_vm6 = vmor %vm1315_vm5, %vm1316_vm0 }
 0x1f1   : > { %v1312_v40 = vsub.f32 1.0, %v1311_v16 }
 0x1f2   : > { %v1298_v3 = vmul.f32 %v1694_v42, %v1297_v15 }
 0x1f3   : > { %v1313_v18 = vmul.f32 %v1696_v60, %v1312_v40 }
 0x1f4   : > { %v1299_v41 = vadd.f32 %v1694_v42, %v1298_v3 }
 0x1f5   : > { %v1314_v8 = vadd.f32 %v1696_v60, %v1313_v18 }
 0x1f6   : > { %v1303_v46 = vsel %vm3092_vm4, %v1694_v42, %v1299_v41 }
 0x1f7   : > { %v1318_v58 = vsel %vm1317_vm6, %v1696_v60, %v1314_v8  ;;  %v1308_v48 = vsel %vm1305_vm8, %v1307_v7, %v1303_v46 }
 0x1f8   : > { %v1323_v53 = vsel %vm1320_vm7, %v1322_v27, %v1318_v58 }
 0x1f9   : > { %v1327_v56 = vrot.slane %v1323_v53, 7 }
 0x1fb   : > { %v1329_v55 = vsel %vm321_vm1, %v1308_v48, %v1327_v56 }
 0x1fc   : > { %1335 = vst.msk [vmem:[%s272_s18] sm:$0x3] %vm2067_vm2, %v1329_v55 }
 0x1fd   : > { %1829 = shalt.err (!%p1826_p0)
}
 0x1fe   : > { %1598 = dma.vmem_to_hbm [thread:$0]  (%p2013_p3), %s1350_s6, 32, %s1352_s8, %s1337_s22  }
 0x1ff PF: > { %s3286_s21 = sld [smem:[#allocation21_spill]]  ;;  %s1363_s20 = sand.u32 1, %s1876_s15  }
 0x200   : > { %p1615_p5 = pnand %p1470_p9, %p1983_p6  ;;  %s1364_s24 = scalar_lea.sflag [#allocation6], %s1363_s20 }
 0x202   : > { %p1616_p7 = pneg %p1615_p5 }
 0x204   : > { %1871 = dma.done.wait (%p1616_p7), %s1364_s24, 32  }
 0x205   : > { %1873 = vsyncadd (%p1616_p7), %s1364_s24, 4294967264  ;;  %s20_s20 = sadd.s32 1, %s3286_s21   ;;  %s3287_s15 = sld [smem:[#allocation18_spill]] }
 0x206   : > { %p17_p10 = scmp.ge.s32.totalorder %s20_s20, 4   ;;  %s3288_s16 = sld [smem:[#allocation19_spill]] }
 0x207   : > { %s3289_s17 = sld [smem:[#allocation24_spill]] }
 0x208   : > { %s3290_s18 = sld [smem:[#allocation20_spill]]  ;;  %19 = sbr.rel (!%p17_p10) target bundleno = 12 (0xc), region = 117 }
 0x209   : > { %s3291_s19 = sld [smem:[#allocation23_spill]] }
 0x20d   :  { %1370 = vsyncpa [#allocation5], 1 }
 0x20e   :  { %1372 = vsyncpa [#allocation5 + $0x1], 1 }
 0x20f   :  { %1373 = vsyncpa [#allocation10], 1 }
 0x210   :  { %1374 = vsyncpa [#allocation6], 1 }
 0x211   :  { %1376 = vsyncpa [#allocation6 + $0x1], 1 }
 0x212   :  { %1377 = vsyncpa [#allocation7], 1 }
 0x213   :  { %1379 = vsyncpa [#allocation7 + $0x1], 1 }

</bundles_post_ra>
